<compile_context>
chip_gen: v6e
topology: v6e:2x2x1
jax: 0.10.0
libtpu: 0.0.40
codegen_flags: <defaults>
</compile_context>

<pallas_src>
import jax
import jax.numpy as jnp
from jax import lax
from jax.experimental import pallas as pl
from jax.experimental.pallas import tpu as pltpu


_VMEM_LIMIT = 32 * 1024 * 1024  # safe scoped-VMEM budget on v5e / v6e / v7x


# ---------------------------------------------------------------------------
# Fused kernel: conv1 + BN + ReLU -> polyphase ConvTranspose2d(3,2,1,1) + BN +
#               ReLU -> conv2 (1x1) + BN + ReLU, one input row-tile per step.
# ---------------------------------------------------------------------------
def _build_fused_kernel(h, w, tr, cin, cmid, cout, ragged):
    f32 = jnp.float32
    bf16 = jnp.bfloat16
    m = tr * w

    def kernel(x_ref, xh_ref, w1_ref, b1_ref, wt00_ref, wt01_ref, wt10_ref,
               wt11_ref, b2_ref, w2_ref, b3_ref, o_ref):
        i = pl.program_id(1)

        # ---- conv1 (BN1 scale folded into w1) + shift + ReLU ----------------
        mid = jnp.dot(x_ref[0].reshape(m, cin), w1_ref[...],
                      preferred_element_type=f32)
        mid = jnp.maximum(mid + b1_ref[...], 0.0).reshape(tr, w, cmid)
        if ragged:
            # zero rows past the real image bottom (x was row-padded on host)
            rows = i * tr + lax.broadcasted_iota(jnp.int32, (tr, w), 0)
            mid = mid * (rows < h).astype(f32)[:, :, None]
        mid = mid.astype(bf16)

        # conv1 on the one-row halo; zero it past the bottom edge
        hmid = jnp.dot(xh_ref[0, 0], w1_ref[...], preferred_element_type=f32)
        hmid = jnp.maximum(hmid + b1_ref[...], 0.0)
        hmid = hmid * ((i + 1) * tr < h).astype(f32)
        hmid = hmid.astype(bf16).reshape(1, w, cmid)

        # ---- shifted views for the polyphase transposed conv ----------------
        zero_col = jnp.zeros((tr, 1, cmid), bf16)
        a00 = mid                                                  # (r,   c)
        if tr > 1:
            a10 = jnp.concatenate([mid[1:], hmid], axis=0)         # (r+1, c)
        else:
            a10 = hmid
        a01 = jnp.concatenate([mid[:, 1:, :], zero_col], axis=1)   # (r,   c+1)
        a11 = jnp.concatenate([a10[:, 1:, :], zero_col], axis=1)   # (r+1, c+1)

        a00 = a00.reshape(m, cmid)
        a01 = a01.reshape(m, cmid)
        a10 = a10.reshape(m, cmid)
        a11 = a11.reshape(m, cmid)

        # ---- wide-RHS tap matmuls (BN2 scale folded into the taps) ----------
        r00 = jnp.dot(a00, wt00_ref[...], preferred_element_type=f32)  # (m,4C)
        r01 = jnp.dot(a01, wt01_ref[...], preferred_element_type=f32)  # (m,2C)
        r10 = jnp.dot(a10, wt10_ref[...], preferred_element_type=f32)  # (m,2C)
        r11 = jnp.dot(a11, wt11_ref[...], preferred_element_type=f32)  # (m, C)

        c = cmid
        # output (2r+dr, 2c+dc):  ee=(0,0)  eo=(0,1)  oe=(1,0)  oo=(1,1)
        ee = r00[:, 0 * c:1 * c]
        eo = r00[:, 1 * c:2 * c] + r01[:, 0 * c:1 * c]
        oe = r00[:, 2 * c:3 * c] + r10[:, 0 * c:1 * c]
        oo = (r00[:, 3 * c:4 * c] + r01[:, 1 * c:2 * c]
              + r10[:, 1 * c:2 * c] + r11)

        # ---- BN2 shift + ReLU, one batched conv2 (BN3 scale folded) ---------
        z = jnp.concatenate([ee, eo, oe, oo], axis=0)               # (4m, C)
        z = jnp.maximum(z + b2_ref[...], 0.0).astype(bf16)
        z = jnp.dot(z, w2_ref[...], preferred_element_type=f32)     # (4m, Co)
        z = jnp.maximum(z + b3_ref[...], 0.0).astype(o_ref.dtype)
        z = z.reshape(4, tr, w, cout)

        # ---- lane-packed, row-interleaved slab stores ------------------------
        # o block is (1, TR, 2, W, 2*Co); lane index j = dc*Co + ch.
        o_ref[0, :, 0, :, :] = jnp.concatenate([z[0], z[1]], axis=-1)  # even rows
        o_ref[0, :, 1, :, :] = jnp.concatenate([z[2], z[3]], axis=-1)  # odd rows

    return kernel


# ---------------------------------------------------------------------------
# Row-tile selection: budget counts in-kernel intermediates, not just I/O.
# ---------------------------------------------------------------------------
def _pick_row_tile(h, w, cin, cmid, cout, max_rows, budget_bytes):
    def footprint(tr):
        m = tr * w
        x_io = 2 * (tr + 1) * w * cin * 2                 # x tile + halo, 2 bufs
        out_io = 2 * tr * 2 * w * 2 * cout * 2            # output block, 2 bufs
        wts = 2 * (cin * cmid + 9 * cmid * cmid + cmid * cout) * 2
        mid = (m + w) * cmid * 2                          # conv1 out (bf16)
        views = 3 * m * cmid * 2                          # shifted copies
        taps = 9 * m * cmid * 4                           # wide matmul results
        epi = 4 * m * cmid * 2 + 2 * 4 * m * cout * 4     # concat + conv2 out
        return x_io + out_io + wts + mid + views + taps + epi

    tr = max(1, min(max_rows, h))
    while tr > 1 and footprint(tr) > budget_bytes:
        tr -= 1
    return tr


# ---------------------------------------------------------------------------
# Parameters (deterministic, synthetic); BN scales folded into weights in f32.
# ---------------------------------------------------------------------------
def _fold_bn(key, c):
    k1, k2, k3, k4 = jax.random.split(key, 4)
    gamma = 1.0 + 0.1 * jax.random.normal(k1, (c,), jnp.float32)
    beta = 0.1 * jax.random.normal(k2, (c,), jnp.float32)
    mean = 0.1 * jax.random.normal(k3, (c,), jnp.float32)
    var = jax.random.uniform(k4, (c,), jnp.float32, minval=0.5, maxval=1.5)
    scale = gamma / jnp.sqrt(var + 1e-5)
    shift = beta - mean * scale
    return scale, shift


def make_decoder_params(key, in_planes, out_planes):
    mid = in_planes // 4
    ks = jax.random.split(key, 6)
    p = {}

    # conv1 + BN1
    w1 = 0.1 * jax.random.normal(ks[0], (in_planes, mid), jnp.float32)
    s1, b1 = _fold_bn(ks[1], mid)
    p["w1"] = (w1 * s1[None, :]).astype(jnp.bfloat16)
    p["b1"] = b1.reshape(1, mid)

    # tp_conv + BN2: PyTorch ConvTranspose2d weight (Cin, Cout, kh, kw), used
    # in scatter form (no spatial flip).  Fold BN2 scale per Cout, then pack
    # taps into wide-RHS banks grouped by the shifted input view they multiply.
    wt = 0.1 * jax.random.normal(ks[2], (mid, mid, 3, 3), jnp.float32)
    s2, b2 = _fold_bn(ks[3], mid)
    wt = wt * s2[None, :, None, None]
    taps = jnp.transpose(wt, (2, 3, 0, 1))                 # (kh, kw, Cin, Cout)
    p["wt_taps"] = taps.astype(jnp.bfloat16)               # for the reference
    t = lambda kh, kw: taps[kh, kw]
    p["wt00"] = jnp.concatenate([t(1, 1), t(1, 2), t(2, 1), t(2, 2)],
                                axis=1).astype(jnp.bfloat16)       # a00 bank
    p["wt01"] = jnp.concatenate([t(1, 0), t(2, 0)], axis=1).astype(jnp.bfloat16)
    p["wt10"] = jnp.concatenate([t(0, 1), t(0, 2)], axis=1).astype(jnp.bfloat16)
    p["wt11"] = t(0, 0).astype(jnp.bfloat16)
    p["b2"] = b2.reshape(1, mid)

    # conv2 + BN3
    w2 = 0.1 * jax.random.normal(ks[4], (mid, out_planes), jnp.float32)
    s3, b3 = _fold_bn(ks[5], out_planes)
    p["w2"] = (w2 * s3[None, :]).astype(jnp.bfloat16)
    p["b3"] = b3.reshape(1, out_planes)
    return p


# ---------------------------------------------------------------------------
# Forward pass
# ---------------------------------------------------------------------------
def decoder_forward(params, x_nchw, *, max_row_tile=32,
                    vmem_budget=14 * 1024 * 1024):
    n, cin, h, w = x_nchw.shape
    cmid = params["w1"].shape[1]
    cout = params["w2"].shape[1]

    tr = _pick_row_tile(h, w, cin, cmid, cout, max_row_tile, vmem_budget)
    nrt = (h + tr - 1) // tr
    h_pad = nrt * tr
    ragged = h_pad != h

    # NCHW -> NHWC in bf16; pad rows to a full extra tile so the 1-row halo
    # BlockSpec never produces an out-of-bounds block index.
    x = jnp.transpose(x_nchw, (0, 2, 3, 1)).astype(jnp.bfloat16)
    x = jnp.pad(x, ((0, 0), (0, h_pad + tr - h), (0, 0), (0, 0)))

    kernel = _build_fused_kernel(h, w, tr, cin, cmid, cout, ragged)

    y = pl.pallas_call(
        kernel,
        out_shape=jax.ShapeDtypeStruct((n, h_pad, 2, w, 2 * cout),
                                       jnp.bfloat16),
        grid=(n, nrt),
        in_specs=[
            pl.BlockSpec((1, tr, w, cin), lambda b, i: (b, i, 0, 0)),
            pl.BlockSpec((1, 1, w, cin), lambda b, i: (b, (i + 1) * tr, 0, 0)),
            pl.BlockSpec((cin, cmid), lambda b, i: (0, 0)),
            pl.BlockSpec((1, cmid), lambda b, i: (0, 0)),
            pl.BlockSpec((cmid, 4 * cmid), lambda b, i: (0, 0)),
            pl.BlockSpec((cmid, 2 * cmid), lambda b, i: (0, 0)),
            pl.BlockSpec((cmid, 2 * cmid), lambda b, i: (0, 0)),
            pl.BlockSpec((cmid, cmid), lambda b, i: (0, 0)),
            pl.BlockSpec((1, cmid), lambda b, i: (0, 0)),
            pl.BlockSpec((cmid, cout), lambda b, i: (0, 0)),
            pl.BlockSpec((1, cout), lambda b, i: (0, 0)),
        ],
        out_specs=pl.BlockSpec((1, tr, 2, w, 2 * cout),
                               lambda b, i: (b, i, 0, 0, 0)),
        compiler_params=pltpu.CompilerParams(
            dimension_semantics=("parallel", "parallel"),
            vmem_limit_bytes=_VMEM_LIMIT),
    )(x, x, params["w1"], params["b1"],
      params["wt00"], params["wt01"], params["wt10"], params["wt11"],
      params["b2"], params["w2"], params["b3"])

    # (n, h_pad, 2, w, 2*cout) is row-major identical to (n, 2*h_pad, 2w, cout)
    y = y.reshape(n, 2 * h_pad, 2 * w, cout)
    if ragged:
        y = y[:, :2 * h]
    # TODO(synk): the final NHWC->NCHW transpose is kept only to match the
    # PyTorch module's output layout; fold it into the consumer when possible.
    return jnp.transpose(y, (0, 3, 1, 2)).astype(jnp.float32)


# ---------------------------------------------------------------------------
# Pure-XLA reference (mirrors the kernel's bf16 cast points & folded weights)
# ---------------------------------------------------------------------------
def decoder_reference(params, x_nchw):
    f32 = jnp.float32
    hp = lax.Precision.HIGHEST
    x = jnp.transpose(x_nchw, (0, 2, 3, 1)).astype(jnp.bfloat16).astype(f32)

    h = jnp.einsum("nhwc,cd->nhwd", x, params["w1"].astype(f32), precision=hp)
    h = jnp.maximum(h + params["b1"], 0.0).astype(jnp.bfloat16).astype(f32)

    taps = params["wt_taps"].astype(f32)            # (3,3,Cin,Cout), folded
    w_flip = taps[::-1, ::-1]   # transposed conv == lhs-dilated conv, flipped
    y = lax.conv_general_dilated(
        h, w_flip, window_strides=(1, 1), padding=[(1, 2), (1, 2)],
        lhs_dilation=(2, 2), dimension_numbers=("NHWC", "HWIO", "NHWC"),
        precision=hp)
    y = jnp.maximum(y + params["b2"], 0.0).astype(jnp.bfloat16).astype(f32)

    z = jnp.einsum("nhwc,cd->nhwd", y, params["w2"].astype(f32), precision=hp)
    z = jnp.maximum(z + params["b3"], 0.0).astype(jnp.bfloat16).astype(f32)
    return jnp.transpose(z, (0, 3, 1, 2))


if __name__ == "__main__":
    key = jax.random.PRNGKey(0)
    kx, kp = jax.random.split(key)

    in_planes, out_planes = 32, 16
    N, H, W = 2, 10, 16          # H deliberately NOT a multiple of the row tile

    x = jax.random.normal(kx, (N, in_planes, H, W), jnp.float32)
    params = make_decoder_params(kp, in_planes, out_planes)

    # small row tile in the demo to exercise a multi-step grid + ragged tile
    fwd = jax.jit(lambda p, v: decoder_forward(p, v, max_row_tile=4))
    y = jax.block_until_ready(fwd(params, x))

    assert y.shape == (N, out_planes, 2 * H, 2 * W), y.shape
    assert bool(jnp.all(y >= 0.0))  # ReLU output

    y_ref = decoder_reference(params, x)
    max_err = float(jnp.max(jnp.abs(y - y_ref)))
    assert jnp.allclose(y, y_ref, rtol=2e-2, atol=1e-2), max_err

    print("KERNEL_OK")
</pallas_src>

<mosaic_0001>
module attributes {stable_mosaic.version = 11 : i64} {
  func.func @kernel(%arg0: i32, %arg1: i32, %arg2: memref<1x4x16x32xbf16, #tpu.memory_space<vmem>>, %arg3: memref<1x1x16x32xbf16, #tpu.memory_space<vmem>>, %arg4: memref<32x8xbf16, #tpu.memory_space<vmem>>, %arg5: memref<1x8xf32, #tpu.memory_space<vmem>>, %arg6: memref<8x32xbf16, #tpu.memory_space<vmem>>, %arg7: memref<8x16xbf16, #tpu.memory_space<vmem>>, %arg8: memref<8x16xbf16, #tpu.memory_space<vmem>>, %arg9: memref<8x8xbf16, #tpu.memory_space<vmem>>, %arg10: memref<1x8xf32, #tpu.memory_space<vmem>>, %arg11: memref<8x16xbf16, #tpu.memory_space<vmem>>, %arg12: memref<1x16xf32, #tpu.memory_space<vmem>>, %arg13: memref<1x4x2x16x32xbf16, #tpu.memory_space<vmem>>) attributes {dimension_semantics = [#tpu.dimension_semantics<parallel>, #tpu.dimension_semantics<parallel>], iteration_bounds = array<i64: 2, 3>, scalar_prefetch = 0 : i64, scratch_operands = 0 : i64, tpu.core_type = #tpu.core_type<tc>, window_params = [{transform_indices = @transform_0, window_bounds = array<i64: 1, 4, 16, 32>}, {transform_indices = @transform_1, window_bounds = array<i64: 1, 1, 16, 32>}, {pipeline_mode = #tpu.pipeline_mode<synchronous>, transform_indices = @transform_2, window_bounds = array<i64: 32, 8>}, {pipeline_mode = #tpu.pipeline_mode<synchronous>, transform_indices = @transform_3, window_bounds = array<i64: 1, 8>}, {pipeline_mode = #tpu.pipeline_mode<synchronous>, transform_indices = @transform_4, window_bounds = array<i64: 8, 32>}, {pipeline_mode = #tpu.pipeline_mode<synchronous>, transform_indices = @transform_5, window_bounds = array<i64: 8, 16>}, {pipeline_mode = #tpu.pipeline_mode<synchronous>, transform_indices = @transform_6, window_bounds = array<i64: 8, 16>}, {pipeline_mode = #tpu.pipeline_mode<synchronous>, transform_indices = @transform_7, window_bounds = array<i64: 8, 8>}, {pipeline_mode = #tpu.pipeline_mode<synchronous>, transform_indices = @transform_8, window_bounds = array<i64: 1, 8>}, {pipeline_mode = #tpu.pipeline_mode<synchronous>, transform_indices = @transform_9, window_bounds = array<i64: 8, 16>}, {pipeline_mode = #tpu.pipeline_mode<synchronous>, transform_indices = @transform_10, window_bounds = array<i64: 1, 16>}, {transform_indices = @transform_11, window_bounds = array<i64: 1, 4, 2, 16, 32>}]} {
    %c0 = arith.constant 0 : index
    %c0_0 = arith.constant 0 : index
    %c0_1 = arith.constant 0 : index
    %c0_2 = arith.constant 0 : index
    %0 = vector.load %arg2[%c0, %c0_0, %c0_1, %c0_2] : memref<1x4x16x32xbf16, #tpu.memory_space<vmem>>, vector<1x4x16x32xbf16>
    %1 = vector.shape_cast %0 : vector<1x4x16x32xbf16> to vector<4x16x32xbf16>
    %2 = vector.shape_cast %1 : vector<4x16x32xbf16> to vector<64x32xbf16>
    %c0_3 = arith.constant 0 : index
    %c0_4 = arith.constant 0 : index
    %3 = vector.load %arg4[%c0_3, %c0_4] : memref<32x8xbf16, #tpu.memory_space<vmem>>, vector<32x8xbf16>
    %cst = arith.constant dense<0.000000e+00> : vector<64x8xf32>
    %4 = tpu.matmul %2, %3, %cst {dimension_numbers = #tpu.dot_dimension_numbers<[1], [0], [0], [1], [0, 0, 1, 1], [], []>} : vector<64x32xbf16>, vector<32x8xbf16>, vector<64x8xf32> -> vector<64x8xf32>
    %c0_5 = arith.constant 0 : index
    %c0_6 = arith.constant 0 : index
    %5 = vector.load %arg5[%c0_5, %c0_6] : memref<1x8xf32, #tpu.memory_space<vmem>>, vector<1x8xf32>
    %6 = vector.broadcast %5 : vector<1x8xf32> to vector<64x8xf32>
    %7 = arith.addf %4, %6 : vector<64x8xf32>
    %cst_7 = arith.constant 0.000000e+00 : f32
    %8 = vector.broadcast %cst_7 : f32 to vector<64x8xf32>
    %9 = arith.maximumf %7, %8 : vector<64x8xf32>
    %10 = vector.shape_cast %9 : vector<64x8xf32> to vector<4x16x8xf32>
    %c4_i32 = arith.constant 4 : i32
    %11 = arith.muli %arg1, %c4_i32 : i32
    %12 = tpu.iota {dimensions = array<i32: 0>} : vector<4x16xi32>
    %13 = vector.broadcast %11 : i32 to vector<4x16xi32>
    %14 = arith.addi %13, %12 : vector<4x16xi32>
    %c10_i32 = arith.constant 10 : i32
    %15 = vector.broadcast %c10_i32 : i32 to vector<4x16xi32>
    %16 = arith.cmpi slt, %14, %15 : vector<4x16xi32>
    %17 = arith.extui %16 : vector<4x16xi1> to vector<4x16xi32>
    %18 = arith.sitofp %17 : vector<4x16xi32> to vector<4x16xf32>
    %19 = vector.shape_cast %18 : vector<4x16xf32> to vector<4x16x1xf32>
    %20 = vector.broadcast %19 : vector<4x16x1xf32> to vector<4x16x8xf32>
    %21 = arith.mulf %10, %20 : vector<4x16x8xf32>
    %22 = arith.truncf %21 : vector<4x16x8xf32> to vector<4x16x8xbf16>
    %c0_8 = arith.constant 0 : index
    %c0_9 = arith.constant 0 : index
    %c0_10 = arith.constant 0 : index
    %c0_11 = arith.constant 0 : index
    %23 = vector.load %arg3[%c0_8, %c0_9, %c0_10, %c0_11] : memref<1x1x16x32xbf16, #tpu.memory_space<vmem>>, vector<1x1x16x32xbf16>
    %24 = vector.shape_cast %23 : vector<1x1x16x32xbf16> to vector<16x32xbf16>
    %c0_12 = arith.constant 0 : index
    %c0_13 = arith.constant 0 : index
    %25 = vector.load %arg4[%c0_12, %c0_13] : memref<32x8xbf16, #tpu.memory_space<vmem>>, vector<32x8xbf16>
    %cst_14 = arith.constant dense<0.000000e+00> : vector<16x8xf32>
    %26 = tpu.matmul %24, %25, %cst_14 {dimension_numbers = #tpu.dot_dimension_numbers<[1], [0], [0], [1], [0, 0, 1, 1], [], []>} : vector<16x32xbf16>, vector<32x8xbf16>, vector<16x8xf32> -> vector<16x8xf32>
    %c0_15 = arith.constant 0 : index
    %c0_16 = arith.constant 0 : index
    %27 = vector.load %arg5[%c0_15, %c0_16] : memref<1x8xf32, #tpu.memory_space<vmem>>, vector<1x8xf32>
    %28 = vector.broadcast %27 : vector<1x8xf32> to vector<16x8xf32>
    %29 = arith.addf %26, %28 : vector<16x8xf32>
    %cst_17 = arith.constant 0.000000e+00 : f32
    %30 = vector.broadcast %cst_17 : f32 to vector<16x8xf32>
    %31 = arith.maximumf %29, %30 : vector<16x8xf32>
    %c1_i32 = arith.constant 1 : i32
    %32 = arith.addi %arg1, %c1_i32 : i32
    %c4_i32_18 = arith.constant 4 : i32
    %33 = arith.muli %32, %c4_i32_18 : i32
    %c10_i32_19 = arith.constant 10 : i32
    %34 = arith.cmpi slt, %33, %c10_i32_19 : i32
    %35 = arith.extui %34 : i1 to i32
    %36 = arith.sitofp %35 : i32 to f32
    %37 = vector.broadcast %36 : f32 to vector<16x8xf32>
    %38 = arith.mulf %31, %37 : vector<16x8xf32>
    %39 = arith.truncf %38 : vector<16x8xf32> to vector<16x8xbf16>
    %40 = vector.shape_cast %39 : vector<16x8xbf16> to vector<1x16x8xbf16>
    %cst_20 = arith.constant 0.000000e+00 : bf16
    %41 = vector.broadcast %cst_20 : bf16 to vector<4x1x8xbf16>
    %42 = vector.extract_strided_slice %22 {offsets = [1, 0, 0], sizes = [3, 16, 8], strides = [1, 1, 1]} : vector<4x16x8xbf16> to vector<3x16x8xbf16>
    %43 = tpu.concatenate %42, %40 in 0 : vector<3x16x8xbf16>, vector<1x16x8xbf16> -> vector<4x16x8xbf16>
    %44 = vector.extract_strided_slice %22 {offsets = [0, 1, 0], sizes = [4, 15, 8], strides = [1, 1, 1]} : vector<4x16x8xbf16> to vector<4x15x8xbf16>
    %45 = tpu.concatenate %44, %41 in 1 : vector<4x15x8xbf16>, vector<4x1x8xbf16> -> vector<4x16x8xbf16>
    %46 = vector.extract_strided_slice %43 {offsets = [0, 1, 0], sizes = [4, 15, 8], strides = [1, 1, 1]} : vector<4x16x8xbf16> to vector<4x15x8xbf16>
    %47 = tpu.concatenate %46, %41 in 1 : vector<4x15x8xbf16>, vector<4x1x8xbf16> -> vector<4x16x8xbf16>
    %48 = vector.shape_cast %22 : vector<4x16x8xbf16> to vector<64x8xbf16>
    %49 = vector.shape_cast %45 : vector<4x16x8xbf16> to vector<64x8xbf16>
    %50 = vector.shape_cast %43 : vector<4x16x8xbf16> to vector<64x8xbf16>
    %51 = vector.shape_cast %47 : vector<4x16x8xbf16> to vector<64x8xbf16>
    %c0_21 = arith.constant 0 : index
    %c0_22 = arith.constant 0 : index
    %52 = vector.load %arg6[%c0_21, %c0_22] : memref<8x32xbf16, #tpu.memory_space<vmem>>, vector<8x32xbf16>
    %cst_23 = arith.constant dense<0.000000e+00> : vector<64x32xf32>
    %53 = tpu.matmul %48, %52, %cst_23 {dimension_numbers = #tpu.dot_dimension_numbers<[1], [0], [0], [1], [0, 0, 1, 1], [], []>} : vector<64x8xbf16>, vector<8x32xbf16>, vector<64x32xf32> -> vector<64x32xf32>
    %c0_24 = arith.constant 0 : index
    %c0_25 = arith.constant 0 : index
    %54 = vector.load %arg7[%c0_24, %c0_25] : memref<8x16xbf16, #tpu.memory_space<vmem>>, vector<8x16xbf16>
    %cst_26 = arith.constant dense<0.000000e+00> : vector<64x16xf32>
    %55 = tpu.matmul %49, %54, %cst_26 {dimension_numbers = #tpu.dot_dimension_numbers<[1], [0], [0], [1], [0, 0, 1, 1], [], []>} : vector<64x8xbf16>, vector<8x16xbf16>, vector<64x16xf32> -> vector<64x16xf32>
    %c0_27 = arith.constant 0 : index
    %c0_28 = arith.constant 0 : index
    %56 = vector.load %arg8[%c0_27, %c0_28] : memref<8x16xbf16, #tpu.memory_space<vmem>>, vector<8x16xbf16>
    %cst_29 = arith.constant dense<0.000000e+00> : vector<64x16xf32>
    %57 = tpu.matmul %50, %56, %cst_29 {dimension_numbers = #tpu.dot_dimension_numbers<[1], [0], [0], [1], [0, 0, 1, 1], [], []>} : vector<64x8xbf16>, vector<8x16xbf16>, vector<64x16xf32> -> vector<64x16xf32>
    %c0_30 = arith.constant 0 : index
    %c0_31 = arith.constant 0 : index
    %58 = vector.load %arg9[%c0_30, %c0_31] : memref<8x8xbf16, #tpu.memory_space<vmem>>, vector<8x8xbf16>
    %cst_32 = arith.constant dense<0.000000e+00> : vector<64x8xf32>
    %59 = tpu.matmul %51, %58, %cst_32 {dimension_numbers = #tpu.dot_dimension_numbers<[1], [0], [0], [1], [0, 0, 1, 1], [], []>} : vector<64x8xbf16>, vector<8x8xbf16>, vector<64x8xf32> -> vector<64x8xf32>
    %60 = vector.extract_strided_slice %53 {offsets = [0, 0], sizes = [64, 8], strides = [1, 1]} : vector<64x32xf32> to vector<64x8xf32>
    %61 = vector.extract_strided_slice %53 {offsets = [0, 8], sizes = [64, 8], strides = [1, 1]} : vector<64x32xf32> to vector<64x8xf32>
    %62 = vector.extract_strided_slice %55 {offsets = [0, 0], sizes = [64, 8], strides = [1, 1]} : vector<64x16xf32> to vector<64x8xf32>
    %63 = arith.addf %61, %62 : vector<64x8xf32>
    %64 = vector.extract_strided_slice %53 {offsets = [0, 16], sizes = [64, 8], strides = [1, 1]} : vector<64x32xf32> to vector<64x8xf32>
    %65 = vector.extract_strided_slice %57 {offsets = [0, 0], sizes = [64, 8], strides = [1, 1]} : vector<64x16xf32> to vector<64x8xf32>
    %66 = arith.addf %64, %65 : vector<64x8xf32>
    %67 = vector.extract_strided_slice %53 {offsets = [0, 24], sizes = [64, 8], strides = [1, 1]} : vector<64x32xf32> to vector<64x8xf32>
    %68 = vector.extract_strided_slice %55 {offsets = [0, 8], sizes = [64, 8], strides = [1, 1]} : vector<64x16xf32> to vector<64x8xf32>
    %69 = arith.addf %67, %68 : vector<64x8xf32>
    %70 = vector.extract_strided_slice %57 {offsets = [0, 8], sizes = [64, 8], strides = [1, 1]} : vector<64x16xf32> to vector<64x8xf32>
    %71 = arith.addf %69, %70 : vector<64x8xf32>
    %72 = arith.addf %71, %59 : vector<64x8xf32>
    %73 = tpu.concatenate %60, %63, %66, %72 in 0 : vector<64x8xf32>, vector<64x8xf32>, vector<64x8xf32>, vector<64x8xf32> -> vector<256x8xf32>
    %c0_33 = arith.constant 0 : index
    %c0_34 = arith.constant 0 : index
    %74 = vector.load %arg10[%c0_33, %c0_34] : memref<1x8xf32, #tpu.memory_space<vmem>>, vector<1x8xf32>
    %75 = vector.broadcast %74 : vector<1x8xf32> to vector<256x8xf32>
    %76 = arith.addf %73, %75 : vector<256x8xf32>
    %cst_35 = arith.constant 0.000000e+00 : f32
    %77 = vector.broadcast %cst_35 : f32 to vector<256x8xf32>
    %78 = arith.maximumf %76, %77 : vector<256x8xf32>
    %79 = arith.truncf %78 : vector<256x8xf32> to vector<256x8xbf16>
    %c0_36 = arith.constant 0 : index
    %c0_37 = arith.constant 0 : index
    %80 = vector.load %arg11[%c0_36, %c0_37] : memref<8x16xbf16, #tpu.memory_space<vmem>>, vector<8x16xbf16>
    %cst_38 = arith.constant dense<0.000000e+00> : vector<256x16xf32>
    %81 = tpu.matmul %79, %80, %cst_38 {dimension_numbers = #tpu.dot_dimension_numbers<[1], [0], [0], [1], [0, 0, 1, 1], [], []>} : vector<256x8xbf16>, vector<8x16xbf16>, vector<256x16xf32> -> vector<256x16xf32>
    %c0_39 = arith.constant 0 : index
    %c0_40 = arith.constant 0 : index
    %82 = vector.load %arg12[%c0_39, %c0_40] : memref<1x16xf32, #tpu.memory_space<vmem>>, vector<1x16xf32>
    %83 = vector.broadcast %82 : vector<1x16xf32> to vector<256x16xf32>
    %84 = arith.addf %81, %83 : vector<256x16xf32>
    %cst_41 = arith.constant 0.000000e+00 : f32
    %85 = vector.broadcast %cst_41 : f32 to vector<256x16xf32>
    %86 = arith.maximumf %84, %85 : vector<256x16xf32>
    %87 = arith.truncf %86 : vector<256x16xf32> to vector<256x16xbf16>
    %88 = vector.shape_cast %87 : vector<256x16xbf16> to vector<4x4x16x16xbf16>
    %89 = vector.extract_strided_slice %88 {offsets = [0, 0, 0, 0], sizes = [1, 4, 16, 16], strides = [1, 1, 1, 1]} : vector<4x4x16x16xbf16> to vector<1x4x16x16xbf16>
    %90 = vector.shape_cast %89 : vector<1x4x16x16xbf16> to vector<4x16x16xbf16>
    %91 = vector.extract_strided_slice %88 {offsets = [1, 0, 0, 0], sizes = [1, 4, 16, 16], strides = [1, 1, 1, 1]} : vector<4x4x16x16xbf16> to vector<1x4x16x16xbf16>
    %92 = vector.shape_cast %91 : vector<1x4x16x16xbf16> to vector<4x16x16xbf16>
    %93 = tpu.concatenate %90, %92 in 2 : vector<4x16x16xbf16>, vector<4x16x16xbf16> -> vector<4x16x32xbf16>
    %c0_42 = arith.constant 0 : index
    %c0_43 = arith.constant 0 : index
    %c0_44 = arith.constant 0 : index
    %c0_45 = arith.constant 0 : index
    %c0_46 = arith.constant 0 : index
    %94 = vector.load %arg13[%c0_42, %c0_43, %c0_44, %c0_45, %c0_46] : memref<1x4x2x16x32xbf16, #tpu.memory_space<vmem>>, vector<1x4x1x16x32xbf16>
    %95 = vector.shape_cast %94 : vector<1x4x1x16x32xbf16> to vector<4x16x32xbf16>
    %96 = vector.shape_cast %93 : vector<4x16x32xbf16> to vector<1x4x1x16x32xbf16>
    tpu.vector_store %arg13[%c0_42, %c0_43, %c0_44, %c0_45, %c0_46], %96 {strides = array<i32>} : memref<1x4x2x16x32xbf16, #tpu.memory_space<vmem>>, vector<1x4x1x16x32xbf16>,
    %97 = vector.extract_strided_slice %88 {offsets = [2, 0, 0, 0], sizes = [1, 4, 16, 16], strides = [1, 1, 1, 1]} : vector<4x4x16x16xbf16> to vector<1x4x16x16xbf16>
    %98 = vector.shape_cast %97 : vector<1x4x16x16xbf16> to vector<4x16x16xbf16>
    %99 = vector.extract_strided_slice %88 {offsets = [3, 0, 0, 0], sizes = [1, 4, 16, 16], strides = [1, 1, 1, 1]} : vector<4x4x16x16xbf16> to vector<1x4x16x16xbf16>
    %100 = vector.shape_cast %99 : vector<1x4x16x16xbf16> to vector<4x16x16xbf16>
    %101 = tpu.concatenate %98, %100 in 2 : vector<4x16x16xbf16>, vector<4x16x16xbf16> -> vector<4x16x32xbf16>
    %c0_47 = arith.constant 0 : index
    %c0_48 = arith.constant 0 : index
    %c1 = arith.constant 1 : index
    %c0_49 = arith.constant 0 : index
    %c0_50 = arith.constant 0 : index
    %102 = vector.load %arg13[%c0_47, %c0_48, %c1, %c0_49, %c0_50] : memref<1x4x2x16x32xbf16, #tpu.memory_space<vmem>>, vector<1x4x1x16x32xbf16>
    %103 = vector.shape_cast %102 : vector<1x4x1x16x32xbf16> to vector<4x16x32xbf16>
    %104 = vector.shape_cast %101 : vector<4x16x32xbf16> to vector<1x4x1x16x32xbf16>
    tpu.vector_store %arg13[%c0_47, %c0_48, %c1, %c0_49, %c0_50], %104 {strides = array<i32>} : memref<1x4x2x16x32xbf16, #tpu.memory_space<vmem>>, vector<1x4x1x16x32xbf16>,
    return
  }
  func.func @transform_0(%arg0: i32, %arg1: i32) -> (i32, i32, i32, i32) {
    %c0_i32 = arith.constant 0 : i32
    %c0_i32_0 = arith.constant 0 : i32
    %c0_i32_1 = arith.constant 0 : i32
    return %arg0, %arg1, %c0_i32, %c0_i32_0 : i32, i32, i32, i32
  }
  func.func @transform_1(%arg0: i32, %arg1: i32) -> (i32, i32, i32, i32) {
    %c1_i32 = arith.constant 1 : i32
    %0 = arith.addi %arg1, %c1_i32 : i32
    %c4_i32 = arith.constant 4 : i32
    %1 = arith.muli %0, %c4_i32 : i32
    %c0_i32 = arith.constant 0 : i32
    %c0_i32_0 = arith.constant 0 : i32
    %c0_i32_1 = arith.constant 0 : i32
    return %arg0, %1, %c0_i32, %c0_i32_0 : i32, i32, i32, i32
  }
  func.func @transform_2(%arg0: i32, %arg1: i32) -> (i32, i32) {
    %c0_i32 = arith.constant 0 : i32
    %c0_i32_0 = arith.constant 0 : i32
    %c0_i32_1 = arith.constant 0 : i32
    return %c0_i32, %c0_i32_0 : i32, i32
  }
  func.func @transform_3(%arg0: i32, %arg1: i32) -> (i32, i32) {
    %c0_i32 = arith.constant 0 : i32
    %c0_i32_0 = arith.constant 0 : i32
    %c0_i32_1 = arith.constant 0 : i32
    return %c0_i32, %c0_i32_0 : i32, i32
  }
  func.func @transform_4(%arg0: i32, %arg1: i32) -> (i32, i32) {
    %c0_i32 = arith.constant 0 : i32
    %c0_i32_0 = arith.constant 0 : i32
    %c0_i32_1 = arith.constant 0 : i32
    return %c0_i32, %c0_i32_0 : i32, i32
  }
  func.func @transform_5(%arg0: i32, %arg1: i32) -> (i32, i32) {
    %c0_i32 = arith.constant 0 : i32
    %c0_i32_0 = arith.constant 0 : i32
    %c0_i32_1 = arith.constant 0 : i32
    return %c0_i32, %c0_i32_0 : i32, i32
  }
  func.func @transform_6(%arg0: i32, %arg1: i32) -> (i32, i32) {
    %c0_i32 = arith.constant 0 : i32
    %c0_i32_0 = arith.constant 0 : i32
    %c0_i32_1 = arith.constant 0 : i32
    return %c0_i32, %c0_i32_0 : i32, i32
  }
  func.func @transform_7(%arg0: i32, %arg1: i32) -> (i32, i32) {
    %c0_i32 = arith.constant 0 : i32
    %c0_i32_0 = arith.constant 0 : i32
    %c0_i32_1 = arith.constant 0 : i32
    return %c0_i32, %c0_i32_0 : i32, i32
  }
  func.func @transform_8(%arg0: i32, %arg1: i32) -> (i32, i32) {
    %c0_i32 = arith.constant 0 : i32
    %c0_i32_0 = arith.constant 0 : i32
    %c0_i32_1 = arith.constant 0 : i32
    return %c0_i32, %c0_i32_0 : i32, i32
  }
  func.func @transform_9(%arg0: i32, %arg1: i32) -> (i32, i32) {
    %c0_i32 = arith.constant 0 : i32
    %c0_i32_0 = arith.constant 0 : i32
    %c0_i32_1 = arith.constant 0 : i32
    return %c0_i32, %c0_i32_0 : i32, i32
  }
  func.func @transform_10(%arg0: i32, %arg1: i32) -> (i32, i32) {
    %c0_i32 = arith.constant 0 : i32
    %c0_i32_0 = arith.constant 0 : i32
    %c0_i32_1 = arith.constant 0 : i32
    return %c0_i32, %c0_i32_0 : i32, i32
  }
  func.func @transform_11(%arg0: i32, %arg1: i32) -> (i32, i32, i32, i32, i32) {
    %c0_i32 = arith.constant 0 : i32
    %c0_i32_0 = arith.constant 0 : i32
    %c0_i32_1 = arith.constant 0 : i32
    %c0_i32_2 = arith.constant 0 : i32
    return %arg0, %arg1, %c0_i32, %c0_i32_0, %c0_i32_1 : i32, i32, i32, i32, i32
  }
}

</mosaic_0001>

<bundles_post_ra>
// kernel: _lambda_.1
= control target key start
LH: loop header
LB: loop body
LE: loop exit
PB: predicated region body
PF: predicated region fallthrough
CT: control target
= control target key end

     0   :  { %s2334_s17 = smov 0   ;;  %s2336_s18 = smov 0   ;;  %s2779_s0 = inlined_call_operand.vmem [shape: bf16[2,16,16,32], index: 0, kind: input, shape index: {}, may-alias: {0,1}]   ;;  %s2780_s1 = inlined_call_operand.vmem [shape: bf16[2,16,16,32], index: 1, kind: input, shape index: {}, may-alias: {0,1}]   ;;  %s2781_s2 = inlined_call_operand.vmem [shape: bf16[32,8], index: 2, kind: input, shape index: {}]   ;;  %s2782_s3 = inlined_call_operand.vmem [shape: f32[1,8], index: 3, kind: input, shape index: {}]   ;;  %s2783_s4 = inlined_call_operand.vmem [shape: bf16[8,32], index: 4, kind: input, shape index: {}]   ;;  %s2784_s5 = inlined_call_operand.vmem [shape: bf16[8,16], index: 5, kind: input, shape index: {}]   ;;  %s2785_s6 = inlined_call_operand.vmem [shape: bf16[8,16], index: 6, kind: input, shape index: {}]   ;;  %s2786_s7 = inlined_call_operand.vmem [shape: bf16[8,8], index: 7, kind: input, shape index: {}]   ;;  %s2787_s8 = inlined_call_operand.vmem [shape: f32[1,8], index: 8, kind: input, shape index: {}]   ;;  %s2788_s9 = inlined_call_operand.vmem [shape: bf16[8,16], index: 9, kind: input, shape index: {}]   ;;  %s2789_s10 = inlined_call_operand.vmem [shape: f32[1,16], index: 10, kind: input, shape index: {}]   ;;  %s2790_s11 = inlined_call_operand.vmem [shape: bf16[2,12,2,16,32], index: 11, kind: output, shape index: {}]  }
   0x1   :  { %s2338_s19 = smov 0   ;;  %s2340_s20 = smov 0  }
   0x2   :  { %s2342_s21 = smov 0  }
   0x3 LB: > { %s30_s22 = sadd.s32 1, %s2256_s19  ;;  %s33_s23 = sadd.s32 1, %s2260_s20  ;;  %s2264_s21 = sphi %s2342_s21, %s21_s21   ;;  %s2260_s20 = sphi %s2340_s20, %s2796_s20   ;;  %s2256_s19 = sphi %s2338_s19, %s2795_s19   ;;  %s2252_s18 = sphi %s2336_s18, %s2794_s18   ;;  %s2248_s17 = sphi %s2334_s17, %s2793_s17  }
   0x4   : > { %p31_p0 = scmp.ge.s32.totalorder %s30_s22, 3  ;;  %p1926_p1 = scmp.ge.s32.totalorder %s2264_s21, 1 }
   0x5   : > { %p383_p2 = scmp.lt.s32.totalorder %s2264_s21, 7 }
   0x6   : > { %s2798_s22 = smov (%p31_p0, %s30_s22), 0  ;;  %s2800_s23 = smov (!%p31_p0, %s33_s23), %s2260_s20 }
   0x7   : > { %p384_p3 = pnand %p1926_p1, %p383_p2  ;;  %p35_p4 = scmp.ge.s32.totalorder %s2800_s23, 2 }
   0x8   : > { %s2367_s26 = sshll.u32 (!%p384_p3), %s2248_s17, 2  ;;  %p445_p5 = scmp.lt.s32.totalorder (!%p384_p3), %s2252_s18, 1 }
   0x9   : > { %s2802_s23 = smov (%p35_p4, %s2800_s23), 0  ;;  %387 = sbr.rel (%p384_p3) target bundleno = 1061 (0x425), region = 64 }
   0xa   : > { %p447_p6 = scmp.lt.s32.totalorder (!%p384_p3), %s2367_s26, 15  ;;  %p471_p7 = scmp.lt.s32.totalorder (!%p384_p3), %s2367_s26, 11 }
   0xb   : > { %s2383_s13 = sadd.s32 (!%p384_p3), 4, %s2367_s26 }
   0xc   : > { %p459_p8 = scmp.lt.s32.totalorder (!%p384_p3), %s2383_s13, 15  ;;  %p708_p9 = scmp.lt.s32.totalorder (!%p384_p3), %s2383_s13, 10 }
   0xe   : > { %v2219_v0 = vld [vmem:[%s2781_s2 + $0x8] sm:$0xff]   ;;  %v618_v1 = vlaneseq  ;;  %v2220_v2 = vld [vmem:[%s2781_s2] sm:$0xff]   ;;  %v620_v3 = vstv %s2367_s26  ;;  %s2804_s18 = smov (!%p445_p5, %s2252_s18), 1  ;;  %v2266_v5 = vmov 0.0   ;;  %vm2267_vm0 = vmmov 0  }
   0xf   : > { %2068 = vmatprep.subr.bf16.mxu0 %v2219_v0  ;;  %2080 = vmatprep.subr.bf16.mxu1 %v2266_v5  ;;  %s448_s29 = scalar_select %p447_p6, %s2367_s26, 15  ;;  %vm531_vm2 = vcmask 261120   ;;  %vm773_vm3 = vcmask 1043456   ;;  %v763_v13 = vld [vmem:[%s2783_s4] sm:$0xf]  ;;  %vm764_vm4 = vcmask 64512  }
  0x10   : > { %v2374_v4 = vshrl.u32 %v618_v1, 7  ;;  %2069 = vmatpush3.bf16.msra.mxu0 %v2219_v0  ;;  %2081 = vmatpush3.bf16.msra.mxu1 %v2219_v0  ;;  %s1929_s30 = sshll.u32 %s2804_s18, 5  ;;  %s2170_s25 = smul.u32 48, %s2804_s18  ;;  %v775_v14 = vsel %vm773_vm3, %v763_v13, 0  ;;  %v842_v15 = vld [vmem:[%s2784_s5] sm:$0xf] }
  0x11   : > { %2070 = vmatprep.subr.bf16.mxu0 %v2220_v2  ;;  %2082 = vmatprep.subr.bf16.mxu1 %v2266_v5  ;;  %s1928_s12 = sshll.u32 %s448_s29, 1  ;;  %s2806_s26 = smov (!%p471_p7, %s2367_s26), 11  ;;  %v856_v16 = vsel %vm773_vm3, %v842_v15, 0  ;;  %v923_v17 = vld [vmem:[%s2785_s6] sm:$0xf]  ;;  %vm747_vm5 = vcmask 1047552  }
  0x12   : > { %v621_v6 = vadd.s32 %v620_v3, %v2374_v4  ;;  %2084 = vmatprep.mubr.msk.bf16.mxu1 %vm2267_vm0, %v2266_v5  ;;  %s451_s14 = sadd.s32 %s1929_s30, %s1928_s12  ;;  %s1936_s28 = sshll.u32 %s2806_s26, 2  ;;  %v2423_v18 = vld [vmem:[%s2786_s7] sm:$0xf]  ;;  %v631_v22 = vsub.s32 1, %v2374_v4  ;;  %v627_v24 = vsub.s32 0, %v2374_v4  ;;  %v639_v33 = vsub.s32 3, %v2374_v4 }
  0x13   : > { %s1930_s15 = sshll.u32 %s451_s14, 2  ;;  %s2397_s29 = sadd.s32 %s2170_s25, %s1936_s28  ;;  %v1938_v19 = vld [vmem:[%s2782_s3] ss:$0 sm:$0xff]  ;;  %v635_v46 = vsub.s32 2, %v2374_v4  ;;  %v927_v58 = vsel %vm773_vm3, %v923_v17, 0  ;;  %vm1689_vm8 = vcmask 130048  }
  0x14   : > { %vm622_vm1 = vcmp.lt.s32.totalorder %v621_v6, 10  ;;  %2071 = vmatpush3.bf16.msra.mxu0 %v2220_v2  ;;  %2083 = vmatpush3.bf16.msra.mxu1 %v2220_v2  ;;  %s453_s24 = scalar_lea.vmem %s2779_s0, %s1930_s15  ;;  %vm748_vm6 = vsmask.f32 7424  ;;  %s2270_s28 = smov 24   ;;  %vm1730_vm9 = vcmask 257024  }
  0x15   : > { %v2385_v7 = vsel %vm622_vm1, 1.0, %v2266_v5  ;;  %v2221_v8 = vld [vmem:[%s453_s24] sm:$0xff]   ;;  %v2222_v9 = vld [vmem:[%s453_s24 + $0x8] sm:$0xff]   ;;  %s460_s27 = scalar_select %p459_p8, %s2383_s13, 15  ;;  %v2223_v10 = vld [vmem:[%s453_s24 + $0x10] sm:$0xff]   ;;  %2164 = vmatprep.subr.msk.bf16.mxu1 %vm773_vm3, %v763_v13  ;;  %2165 = vmatprep.subr.msk.bf16.mxu0 %vm773_vm3, %v842_v15 }
  0x16   : > { %2072 = vmatprep.mubr.msk.bf16.mxu0 %vm531_vm2, %v2221_v8  ;;  %v2224_v11 = vld [vmem:[%s453_s24 + $0x18] sm:$0xff]   ;;  %v632_v28 = vrot.slane %v2385_v7, %v631_v22  ;;  %v628_v31 = vrot.slane %v2385_v7, %v627_v24  ;;  %v640_v44 = vrot.slane %v2385_v7, %v639_v33  ;;  %s2440_s16 = scalar_select %p708_p9, 1, 0  ;;  %v636_v56 = vrot.slane %v2385_v7, %v635_v46  ;;  %vm2449_vm7 = vmand %vm747_vm5, %vm748_vm6 }
  0x17   : > { %2073 = vmatmul.mubr.msk.bf16.vlgmr.msra.gmra.mxu0 %vm531_vm2, %v2222_v9  ;;  %s1932_s12 = sshll.u32 %s460_s27, 1  ;;  %v999_v22 = vsel %vm773_vm3, %v2423_v18, 0  ;;  %s2268_s24 = smov 16  }
  0x18   : > { %2076 = vmatprep.mubr.msk.bf16.mxu0 %vm531_vm2, %v2223_v10  ;;  %s463_s14 = sadd.s32 %s1932_s12, %s1929_s30  ;;  %2099 = vmatpush3.bf16.msra.mxu0 %v856_v16  ;;  %s710_s13 = scvt.s32.f32 %s2440_s16 }
  0x19   : > { %s1934_s15 = sshll.u32 %s463_s14, 2  ;;  %2167 = vmatprep.subr.msk.bf16.mxu0 %vm773_vm3, %v2423_v18  ;;  %s2269_s27 = smov 8  }
  0x1a   : > { %s465_s17 = scalar_lea.vmem %s2780_s1, %s1934_s15  ;;  %s2271_s12 = smov 120  }
  0x1b   : > { %v2225_v12 = vld [vmem:[%s465_s17] sm:$0xff]   ;;  %s2272_s14 = smov 112   ;;  %s2273_s15 = smov 104  }
  0x1c   : > { %2085 = vmatmul.mubr.msk.bf16.vlgmr.msra.gmra.mxu1 %vm531_vm2, %v2225_v12 }
  0x1d   : > { %2089 = vmatpush3.bf16.msra.mxu1 %v775_v14 }
  0x1e   : > { %2166 = vmatprep.subr.msk.bf16.mxu1 %vm773_vm3, %v923_v17  ;;  %v711_v17 = vstv %s710_s13  ;;  %s1937_s13 = sshll.u32 %s2397_s29, 2 }
  0x1f   : > { %2077 = vmatmul.mubr.msk.bf16.gmra.mxu0 %vm531_vm2, %v2224_v11  ;;  %s2715_s25 = scalar_lea.vmem %s2790_s11, %s1937_s13 }
  0xd7   : > { %v2074_v20 = vpop.f32.mrf.mxu0 }
  0xd8   : > { %v587_v21 = vadd.f32 %v2074_v20, %v1938_v19 }
  0xd9   : > { %v578_v23 = vpop.f32.mrf.mxu0 }
  0xda   : > { %v579_v25 = vadd.f32 %v1938_v19, %v578_v23  ;;  %v611_v27 = vmax.f32 %v587_v21, 0.0 }
  0xdb   : > { %v2075_v26 = vpop.f32.mrf.mxu0 }
  0xdc   : > { %v590_v29 = vadd.f32 %v2075_v26, %v1938_v19  ;;  %v609_v30 = vmax.f32 %v579_v25, 0.0  ;;  %v697_v34 = vpop.f32.mrf.mxu1  ;;  %v643_v39 = vmul.f32 %v632_v28, %v611_v27 }
  0xdd   : > { %v581_v32 = vpop.f32.mrf.mxu0  ;;  %v698_v2 = vadd.f32 %v1938_v19, %v697_v34 }
  0xde   : > { %v612_v35 = vmax.f32 %v590_v29, 0.0  ;;  %v582_v36 = vadd.f32 %v1938_v19, %v581_v32  ;;  %v2086_v38 = vpop.f32.mrf.mxu1  ;;  %v641_v43 = vmul.f32 %v628_v31, %v609_v30 }
  0xdf   : > { %v2078_v37 = vpop.f32.mrf.mxu0  ;;  %v704_v15 = vmax.f32 %v698_v2, 0.0 }
  0xe0   : > { %v644_v40 = vmul.f32 %v632_v28, %v612_v35  ;;  %v610_v41 = vmax.f32 %v582_v36, 0.0  ;;  %v603_v42 = vadd.f32 %v2078_v37, %v1938_v19  ;;  %v700_v47 = vpop.f32.mrf.mxu1 }
  0xe1   : > { %v594_v45 = vpop.f32.mrf.mxu0  ;;  %v701_v6 = vadd.f32 %v1938_v19, %v700_v47  ;;  %v712_v26 = vmul.f32 %v711_v17, %v704_v15 }
  0xe2   : > { %v650_v48 = vpack.c.bf16 %v644_v40, %v643_v39  ;;  %v642_v49 = vmul.f32 %v628_v31, %v610_v41  ;;  %v615_v50 = vmax.f32 %v603_v42, 0.0  ;;  %v595_v51 = vadd.f32 %v1938_v19, %v594_v45  ;;  %v2087_v53 = vpop.f32.mrf.mxu1  ;;  %v1409_v40 = vld [vmem:[%s2788_s9] sm:$0xf] }
  0xe3   : > { %v2079_v52 = vpop.f32.mrf.mxu0  ;;  %v705_v21 = vmax.f32 %v701_v6, 0.0  ;;  %v1466_v41 = vsel %vm773_vm3, %v1409_v40, 0 }
  0xe4   : > { %v649_v54 = vpack.c.bf16 %v642_v49, %v641_v43  ;;  %v606_v55 = vadd.f32 %v2079_v52, %v1938_v19  ;;  %v725_v59 = vshll.u32 %v650_v48, 16  ;;  %v647_v60 = vmul.f32 %v640_v44, %v615_v50 }
  0xe5   : > { %v597_v57 = vpop.f32.mrf.mxu0  ;;  %v613_v61 = vmax.f32 %v595_v51, 0.0  ;;  %v723_v5 = vshrl.u32 %v650_v48, 16  ;;  %v713_v18 = vmul.f32 %v711_v17, %v705_v21 }
  0xe6   : > { %v616_v62 = vmax.f32 %v606_v55, 0.0  ;;  %v598_v63 = vadd.f32 %v1938_v19, %v597_v57  ;;  %2090 = vmatprep.mubr.msk.bf16.mxu1 %vm764_vm4, %v649_v54  ;;  %v718_v0 = vshll.u32 %v649_v54, 16  ;;  %v727_v1 = vrot.slane %v725_v59, 1 }
  0xe7   : > { %2091 = vmatmul.mubr.msk.bf16.vlgmr.msra.gmra.mxu1 %vm764_vm4, %v650_v48  ;;  %v716_v7 = vshrl.u32 %v649_v54, 16  ;;  %v645_v9 = vmul.f32 %v636_v56, %v613_v61  ;;  %v714_v33 = vpack.c.bf16 %v713_v18, %v712_v26 }
  0xe8   : > { %v648_v3 = vmul.f32 %v640_v44, %v616_v62  ;;  %v614_v4 = vmax.f32 %v598_v63, 0.0  ;;  %2109 = vmatpush3.bf16.msra.mxu1 %v927_v58  ;;  %v720_v8 = vrot.slane %v718_v0, 1  ;;  %v728_v12 = vor.u32 %v727_v1, %v723_v5  ;;  %v2492_v44 = vld [vmem:[%s2787_s8] ss:$0 sm:$0xff] }
  0xe9   : > { %v757_v35 = vshll.u32 %v714_v33, 16  ;;  %v755_v36 = vshrl.u32 %v714_v33, 16  ;;  %2169 = vmatprep.subr.msk.bf16.mxu1 %vm773_vm3, %v1409_v40 }
  0xea   : > { %v652_v10 = vpack.c.bf16 %v648_v3, %v647_v60  ;;  %v646_v11 = vmul.f32 %v636_v56, %v614_v4  ;;  %v721_v13 = vor.u32 %v720_v8, %v716_v7  ;;  %v751_v23 = vsel %vm2449_vm7, %v728_v12, 0 }
  0xeb   : > { %v759_v37 = vrot.slane %v757_v35, 1 }
  0xec   : > { %v651_v16 = vpack.c.bf16 %v646_v11, %v645_v9  ;;  %v739_v20 = vshll.u32 %v652_v10, 16  ;;  %v750_v19 = vsel %vm2449_vm7, %v721_v13, 0  ;;  %v737_v29 = vshrl.u32 %v652_v10, 16 }
  0xed   : > { %2100 = vmatprep.mubr.msk.bf16.mxu0 %vm764_vm4, %v750_v19  ;;  %v760_v38 = vor.u32 %v759_v37, %v755_v36 }
  0xee   : > { %2094 = vmatprep.mubr.msk.bf16.mxu1 %vm764_vm4, %v651_v16  ;;  %v732_v24 = vshll.u32 %v651_v16, 16  ;;  %v741_v25 = vrot.slane %v739_v20, 1  ;;  %2101 = vmatmul.mubr.msk.bf16.vlgmr.msra.gmra.mxu0 %vm764_vm4, %v751_v23  ;;  %v730_v27 = vshrl.u32 %v651_v16, 16 }
  0xef   : > { %2095 = vmatmul.mubr.msk.bf16.gmra.mxu1 %vm764_vm4, %v652_v10  ;;  %2119 = vmatpush3.bf16.msra.mxu0 %v999_v22  ;;  %v762_v39 = vsel %vm2449_vm7, %v760_v38, 0 }
  0xf0   : > { %2110 = vmatprep.mubr.msk.bf16.mxu1 %vm764_vm4, %v650_v48  ;;  %v734_v28 = vrot.slane %v732_v24, 1  ;;  %v742_v31 = vor.u32 %v741_v25, %v737_v29  ;;  %2168 = vmatprep.subr.msk.bf16.mxu0 %vm773_vm3, %v1409_v40 }
  0xf2   : > { %v735_v30 = vor.u32 %v734_v28, %v730_v27  ;;  %v753_v34 = vsel %vm2449_vm7, %v742_v31, 0 }
  0xf4   : > { %v752_v32 = vsel %vm2449_vm7, %v735_v30, 0 }
  0xf5   : > { %2104 = vmatprep.mubr.msk.bf16.mxu0 %vm764_vm4, %v752_v32 }
  0xf6   : > { %2105 = vmatmul.mubr.msk.bf16.gmra.mxu0 %vm764_vm4, %v753_v34 }
  0xf7   : > { %2111 = vmatmul.mubr.msk.bf16.vlgmr.msra.gmra.mxu1 %vm764_vm4, %v651_v16  ;;  %2120 = vmatprep.mubr.msk.bf16.mxu0 %vm764_vm4, %v751_v23 }
  0xf8   : > { %2114 = vmatprep.mubr.msk.bf16.mxu1 %vm764_vm4, %v652_v10  ;;  %2163 = vmatpush3.bf16.msra.mxu1 %v1466_v41 }
  0xfe   : > { %2121 = vmatmul.mubr.msk.bf16.vlgmr.msra.gmra.mxu0 %vm764_vm4, %v752_v32 }
  0xff   : > { %2115 = vmatmul.mubr.msk.bf16.gmra.mxu1 %vm764_vm4, %v714_v33  ;;  %2124 = vmatprep.mubr.msk.bf16.mxu0 %vm764_vm4, %v753_v34 }
 0x100   : > { %2129 = vmatpush3.bf16.msra.mxu0 %v1466_v41 }
 0x106   : > { %2125 = vmatmul.mubr.msk.bf16.gmra.mxu0 %vm764_vm4, %v762_v39 }
 0x1a7   : > { %v2485_v42 = vpop.f32.mrf.mxu1 }
 0x1a8   : > { %v1331_v49 = vadd.f32 %v2485_v42, %v2492_v44 }
 0x1a9   : > { %v2487_v43 = vpop.f32.mrf.mxu1 }
 0x1aa   : > { %v1329_v46 = vadd.f32 %v2492_v44, %v2487_v43  ;;  %v1363_v58 = vmax.f32 %v1331_v49, 0.0 }
 0x1ab   : > { %v2494_v45 = vpop.f32.mrf.mxu1 }
 0x1ac   : > { %v1332_v47 = vadd.f32 %v2494_v45, %v2492_v44  ;;  %v1361_v53 = vmax.f32 %v1329_v46, 0.0 }
 0x1ad   : > { %v2500_v48 = vpop.f32.mrf.mxu1 }
 0x1ae   : > { %v1330_v50 = vadd.f32 %v2492_v44, %v2500_v48  ;;  %v2506_v51 = vpop.f32.mrf.mxu0  ;;  %v1364_v54 = vmax.f32 %v1332_v47, 0.0 }
 0x1af   : > { %v2508_v52 = vpop.f32.mrf.mxu1  ;;  %1150 = vrot.lane.b32.xlu0 %v2506_v51, %s2268_s24 }
 0x1b0   : > { %v1362_v55 = vmax.f32 %v1330_v50, 0.0  ;;  %v2512_v56 = vpop.f32.mrf.mxu0  ;;  %v1394_v62 = vpack.c.bf16 %v1364_v54, %v1363_v58  ;;  %v1335_v3 = vadd.f32 %v2508_v52, %v2492_v44 }
 0x1b1   : > { %v2514_v57 = vpop.f32.mrf.mxu1 }
 0x1b2   : > { %v1393_v59 = vpack.c.bf16 %v1362_v55, %v1361_v53  ;;  %v2516_v60 = vpop.f32.mrf.mxu0  ;;  %v1333_v63 = vadd.f32 %v2492_v44, %v2514_v57  ;;  %v1367_v10 = vmax.f32 %v1335_v3, 0.0 }
 0x1b3   : > { %v2518_v61 = vpop.f32.mrf.mxu1  ;;  %1146 = vrot.lane.b32.xlu0 %v2512_v56, %s2268_s24  ;;  %1152 = vrot.lane.b32.xlu1 %v2516_v60, %s2268_s24 }
 0x1b4   : > { %v1336_v0 = vadd.f32 %v2518_v61, %v2492_v44  ;;  %v895_v1 = vpop.f32.mrf.mxu0  ;;  %2130 = vmatprep.mubr.msk.bf16.mxu0 %vm764_vm4, %v1393_v59  ;;  %v1365_v7 = vmax.f32 %v1333_v63, 0.0 }
 0x1b5   : > { %v2529_v2 = vpop.f32.mrf.mxu1  ;;  %2131 = vmatmul.mubr.msk.bf16.vlgmr.msra.gmra.mxu0 %vm764_vm4, %v1394_v62 }
 0x1b6   : > { %v1334_v4 = vadd.f32 %v2492_v44, %v2529_v2  ;;  %v2106_v5 = vpop.f32.mrf.mxu0  ;;  %v1368_v8 = vmax.f32 %v1336_v0, 0.0 }
 0x1b7   : > { %v2112_v6 = vpop.f32.mrf.mxu1  ;;  %1148 = vrot.lane.b32.xlu1 %v895_v1, %s2268_s24 }
 0x1b8   : > { %v1366_v9 = vmax.f32 %v1334_v4, 0.0  ;;  %1118 = vrot.lane.b32.xlu0 %v2112_v6, %s2268_s24  ;;  %v908_v12 = vpop.f32.mrf.mxu0  ;;  %v1396_v13 = vpack.c.bf16 %v1368_v8, %v1367_v10 }
 0x1b9   : > { %v963_v14 = vpop.f32.mrf.mxu1 }
 0x1ba   : > { %v1395_v11 = vpack.c.bf16 %v1366_v9, %v1365_v7  ;;  %v2107_v15 = vpop.f32.mrf.mxu0 }
 0x1bb   : > { %1086 = vrot.lane.b32.xlu1 %v2106_v5, %s2269_s27  ;;  %v2113_v16 = vpop.f32.mrf.mxu1 }
 0x1bc   : > { %2134 = vmatprep.mubr.msk.bf16.mxu0 %vm764_vm4, %v1395_v11  ;;  %1082 = vrot.lane.b32.xlu0 %v908_v12, %s2269_s27  ;;  %v911_v17 = vpop.f32.mrf.mxu0 }
 0x1bd   : > { %2135 = vmatmul.mubr.msk.bf16.gmra.mxu0 %vm764_vm4, %v1396_v13  ;;  %v966_v21 = vpop.f32.mrf.mxu1 }
 0x1be   : > { %v2122_v20 = vpop.f32.mrf.mxu0 }
 0x1bf   : > { %1088 = vrot.lane.b32.xlu1 %v2107_v15, %s2269_s27  ;;  %v2116_v22 = vpop.f32.mrf.mxu1 }
 0x1c0   : > { %1154 = vrot.lane.b32.xlu0 %v908_v12, %s2268_s24  ;;  %v1035_v19 = vpop.f32.mrf.mxu0 }
 0x1c1   : > { %v979_v24 = vpop.f32.mrf.mxu1 }
 0x1c2   : > { %v2123_v23 = vpop.f32.mrf.mxu0 }
 0x1c3   : > { %1120 = vrot.lane.b32.xlu1 %v2113_v16, %s2268_s24  ;;  %v2117_v25 = vpop.f32.mrf.mxu1 }
 0x1c4   : > { %1114 = vrot.lane.b32.xlu0 %v963_v14, %s2268_s24  ;;  %v1038_v26 = vpop.f32.mrf.mxu0 }
 0x1c5   : > { %v982_v27 = vpop.f32.mrf.mxu1 }
 0x1c6   : > { %v2126_v28 = vpop.f32.mrf.mxu0 }
 0x1c7   : > { %1156 = vrot.lane.b32.xlu1 %v911_v17, %s2268_s24 }
 0x1c8   : > { %1084 = vrot.lane.b32.xlu0 %v911_v17, %s2269_s27  ;;  %v1051_v29 = vpop.f32.mrf.mxu0 }
 0x1ca   : > { %v2127_v18 = vpop.f32.mrf.mxu0 }
 0x1cb   : > { %1116 = vrot.lane.b32.xlu1 %v966_v21, %s2268_s24 }
 0x1cc   : > { %1198 = vrot.lane.b32.xlu0 %v2122_v20, %s2270_s28  ;;  %v1054_v30 = vpop.f32.mrf.mxu0 }
 0x1cf   : > { %1200 = vrot.lane.b32.xlu1 %v2123_v23, %s2270_s28 }
 0x1d0   : > { %1126 = vrot.lane.b32.xlu0 %v2116_v22, %s2268_s24 }
 0x1d3   : > { %1128 = vrot.lane.b32.xlu1 %v2117_v25, %s2268_s24 }
 0x1d4   : > { %1194 = vrot.lane.b32.xlu0 %v1035_v19, %s2270_s28 }
 0x1d7   : > { %1196 = vrot.lane.b32.xlu1 %v1038_v26, %s2270_s28 }
 0x1d8   : > { %1122 = vrot.lane.b32.xlu0 %v979_v24, %s2268_s24 }
 0x1db   : > { %1124 = vrot.lane.b32.xlu1 %v982_v27, %s2268_s24 }
 0x1dc   : > { %1158 = vrot.lane.b32.xlu0 %v2106_v5, %s2268_s24 }
 0x1df   : > { %1160 = vrot.lane.b32.xlu1 %v2107_v15, %s2268_s24 }
 0x1e0   : > { %1074 = vrot.lane.b32.xlu0 %v2512_v56, %s2269_s27 }
 0x1e3   : > { %1076 = vrot.lane.b32.xlu1 %v895_v1, %s2269_s27 }
 0x1e4   : > { %1078 = vrot.lane.b32.xlu0 %v2506_v51, %s2269_s27 }
 0x1e7   : > { %1080 = vrot.lane.b32.xlu1 %v2516_v60, %s2269_s27 }
 0x1e8   : > { %1202 = vrot.lane.b32.xlu0 %v1051_v29, %s2270_s28 }
 0x1eb   : > { %1204 = vrot.lane.b32.xlu1 %v1054_v30, %s2270_s28 }
 0x1ec   : > { %1206 = vrot.lane.b32.xlu0 %v2126_v28, %s2270_s28 }
 0x1ef   : > { %1208 = vrot.lane.b32.xlu1 %v2127_v18, %s2270_s28 }
 0x221   : > { %v1151_v31 = vpop.permute.xlu0 %1150 }
 0x222   : > { %v1172_v13 = vadd.f32 %v2485_v42, %v1151_v31 }
 0x225   : > { %v1147_v32 = vpop.permute.xlu0 %1146  ;;  %v1153_v33 = vpop.permute.xlu1 %1152 }
 0x226   : > { %v1170_v0 = vadd.f32 %v1147_v32, %v2487_v43  ;;  %v1173_v17 = vadd.f32 %v2494_v45, %v1153_v33 }
 0x229   : > { %v1149_v34 = vpop.permute.xlu1 %1148 }
 0x22a   : > { %v1119_v35 = vpop.permute.xlu0 %1118  ;;  %v1171_v5 = vadd.f32 %v1149_v34, %v2500_v48 }
 0x22b   : > { %v1140_v40 = vadd.f32 %v2485_v42, %v1119_v35  ;;  %v1180_v15 = vadd.f32 %v1172_v13, %v1119_v35 }
 0x22d   : > { %v1087_v36 = vpop.permute.xlu1 %1086 }
 0x22e   : > { %v1104_v37 = vadd.f32 %v2508_v52, %v1087_v36  ;;  %v1083_v38 = vpop.permute.xlu0 %1082 }
 0x22f   : > { %v1102_v49 = vadd.f32 %v1083_v38, %v2514_v57 }
 0x230   : > { %1246 = vrot.lane.b32.xlu0 %v1104_v37, %s2271_s12 }
 0x231   : > { %v1089_v39 = vpop.permute.xlu1 %1088 }
 0x232   : > { %v1105_v41 = vadd.f32 %v2518_v61, %v1089_v39  ;;  %v1155_v46 = vpop.permute.xlu0 %1154 }
 0x233   : > { %v1174_v18 = vadd.f32 %v1155_v46, %v2514_v57 }
 0x234   : > { %1270 = vrot.lane.b32.xlu0 %v1140_v40, %s2272_s14  ;;  %1248 = vrot.lane.b32.xlu1 %v1105_v41, %s2271_s12 }
 0x235   : > { %v1121_v47 = vpop.permute.xlu1 %1120 }
 0x236   : > { %v1141_v50 = vadd.f32 %v2494_v45, %v1121_v47  ;;  %v1115_v51 = vpop.permute.xlu0 %1114  ;;  %v1181_v22 = vadd.f32 %v1173_v17, %v1121_v47 }
 0x237   : > { %v1138_v54 = vadd.f32 %v1115_v51, %v2487_v43  ;;  %v1178_v3 = vadd.f32 %v1170_v0, %v1115_v51 }
 0x238   : > { %1242 = vrot.lane.b32.xlu0 %v1102_v49, %s2271_s12  ;;  %1272 = vrot.lane.b32.xlu1 %v1141_v50, %s2272_s14 }
 0x239   : > { %v1157_v53 = vpop.permute.xlu1 %1156 }
 0x23a   : > { %v1085_v55 = vpop.permute.xlu0 %1084 }
 0x23b   : > { %v1103_v56 = vadd.f32 %v1085_v55, %v2529_v2 }
 0x23c   : > { %1266 = vrot.lane.b32.xlu0 %v1138_v54, %s2272_s14 }
 0x23d   : > { %v1117_v58 = vpop.permute.xlu1 %1116  ;;  %1244 = vrot.lane.b32.xlu1 %v1103_v56, %s2271_s12 }
 0x23e   : > { %v1139_v59 = vadd.f32 %v1117_v58, %v2500_v48  ;;  %v1199_v60 = vpop.permute.xlu0 %1198  ;;  %v1179_v9 = vadd.f32 %v1171_v5, %v1117_v58 }
 0x23f   : > { %v1220_v19 = vadd.f32 %v1199_v60, %v1180_v15 }
 0x241   : > { %v1201_v62 = vpop.permute.xlu1 %1200  ;;  %1268 = vrot.lane.b32.xlu1 %v1139_v59, %s2272_s14 }
 0x242   : > { %v1127_v63 = vpop.permute.xlu0 %1126  ;;  %v1221_v24 = vadd.f32 %v1201_v62, %v1181_v22 }
 0x243   : > { %v1144_v1 = vadd.f32 %v2508_v52, %v1127_v63 }
 0x245   : > { %v1129_v4 = vpop.permute.xlu1 %1128  ;;  %1278 = vrot.lane.b32.xlu0 %v1144_v1, %s2272_s14 }
 0x246   : > { %v1145_v6 = vadd.f32 %v2518_v61, %v1129_v4  ;;  %v1195_v7 = vpop.permute.xlu0 %1194 }
 0x247   : > { %v1218_v8 = vadd.f32 %v1195_v7, %v1178_v3 }
 0x248   : > { %1280 = vrot.lane.b32.xlu1 %v1145_v6, %s2272_s14 }
 0x249   : > { %v1197_v10 = vpop.permute.xlu1 %1196  ;;  %1298 = vrot.lane.b32.xlu0 %v1218_v8, %s2273_s15 }
 0x24a   : > { %v1219_v11 = vadd.f32 %v1197_v10, %v1179_v9  ;;  %v1123_v12 = vpop.permute.xlu0 %1122 }
 0x24b   : > { %v1142_v14 = vadd.f32 %v1123_v12, %v2514_v57  ;;  %v1182_v31 = vadd.f32 %v1174_v18, %v1123_v12 }
 0x24c   : > { %1300 = vrot.lane.b32.xlu1 %v1219_v11, %s2273_s15 }
 0x24d   : > { %v1125_v16 = vpop.permute.xlu1 %1124  ;;  %1274 = vrot.lane.b32.xlu0 %v1142_v14, %s2272_s14 }
 0x24e   : > { %v1143_v20 = vadd.f32 %v1125_v16, %v2529_v2  ;;  %v1159_v21 = vpop.permute.xlu0 %1158 }
 0x24f   : > { %v1176_v32 = vadd.f32 %v2508_v52, %v1159_v21 }
 0x250   : > { %1276 = vrot.lane.b32.xlu1 %v1143_v20, %s2272_s14 }
 0x251   : > { %v1161_v23 = vpop.permute.xlu1 %1160  ;;  %1302 = vrot.lane.b32.xlu0 %v1220_v19, %s2273_s15  ;;  %v1184_v57 = vadd.f32 %v1176_v32, %v1127_v63 }
 0x252   : > { %v1075_v25 = vpop.permute.xlu0 %1074  ;;  %v1177_v37 = vadd.f32 %v2518_v61, %v1161_v23  ;;  %v2613_v61 = vld [vmem:[%s2789_s10] ss:$0 sm:$0xff] }
 0x253   : > { %v1098_v26 = vadd.f32 %v1075_v25, %v2487_v43  ;;  %v1175_v43 = vadd.f32 %v1157_v53, %v2529_v2 }
 0x254   : > { %1304 = vrot.lane.b32.xlu1 %v1221_v24, %s2273_s15  ;;  %v1185_v40 = vadd.f32 %v1177_v37, %v1129_v4 }
 0x255   : > { %v1077_v27 = vpop.permute.xlu1 %1076  ;;  %1234 = vrot.lane.b32.xlu0 %v1098_v26, %s2271_s12 }
 0x256   : > { %v1099_v28 = vadd.f32 %v1077_v27, %v2500_v48  ;;  %v1079_v29 = vpop.permute.xlu0 %1078  ;;  %v1183_v48 = vadd.f32 %v1175_v43, %v1125_v16 }
 0x257   : > { %v1100_v30 = vadd.f32 %v2485_v42, %v1079_v29 }
 0x258   : > { %1236 = vrot.lane.b32.xlu1 %v1099_v28, %s2271_s12 }
 0x259   : > { %v1081_v33 = vpop.permute.xlu1 %1080  ;;  %1238 = vrot.lane.b32.xlu0 %v1100_v30, %s2271_s12 }
 0x25a   : > { %v1101_v34 = vadd.f32 %v2494_v45, %v1081_v33  ;;  %v1203_v35 = vpop.permute.xlu0 %1202 }
 0x25b   : > { %v1222_v36 = vadd.f32 %v1203_v35, %v1182_v31 }
 0x25c   : > { %1240 = vrot.lane.b32.xlu1 %v1101_v34, %s2271_s12 }
 0x25d   : > { %1306 = vrot.lane.b32.xlu0 %v1222_v36, %s2273_s15  ;;  %v1205_v42 = vpop.permute.xlu1 %1204 }
 0x25e   : > { %v1223_v38 = vadd.f32 %v1205_v42, %v1183_v48  ;;  %v1207_v52 = vpop.permute.xlu0 %1206 }
 0x25f   : > { %v1224_v39 = vadd.f32 %v1207_v52, %v1184_v57 }
 0x260   : > { %1308 = vrot.lane.b32.xlu1 %v1223_v38, %s2273_s15 }
 0x261   : > { %1310 = vrot.lane.b32.xlu0 %v1224_v39, %s2273_s15  ;;  %v1209_v45 = vpop.permute.xlu1 %1208 }
 0x262   : > { %v1225_v2 = vadd.f32 %v1209_v45, %v1185_v40 }
 0x264   : > { %1312 = vrot.lane.b32.xlu1 %v1225_v2, %s2273_s15 }
 0x275   : > { %v2132_v41 = vpop.f32.mrf.mxu0 }
 0x276   : > { %v1511_v47 = vadd.f32 %v2132_v41, %v2613_v61 }
 0x277   : > { %v1502_v46 = vpop.f32.mrf.mxu0 }
 0x278   : > { %v1503_v50 = vadd.f32 %v2613_v61, %v1502_v46  ;;  %v1631_v54 = vmax.f32 %v1511_v47, 0.0 }
 0x279   : > { %v2133_v49 = vpop.f32.mrf.mxu0 }
 0x27a   : > { %v1514_v51 = vadd.f32 %v2133_v49, %v2613_v61  ;;  %v1629_v59 = vmax.f32 %v1503_v50, 0.0 }
 0x27b   : > { %v1505_v53 = vpop.f32.mrf.mxu0 }
 0x27c   : > { %v1632_v55 = vmax.f32 %v1514_v51, 0.0  ;;  %v1506_v56 = vadd.f32 %v2613_v61, %v1505_v53 }
 0x27d   : > { %v2136_v58 = vpop.f32.mrf.mxu0 }
 0x27e   : > { %v2619_v60 = vpack.c.bf16 %v1632_v55, %v1631_v54  ;;  %v1630_v62 = vmax.f32 %v1506_v56, 0.0  ;;  %v1527_v1 = vadd.f32 %v2136_v58, %v2613_v61 }
 0x27f   : > { %v2621_v63 = vpop.f32.mrf.mxu0 }
 0x280   : > { %v2623_v0 = vpack.c.bf16 %v1630_v62, %v1629_v59  ;;  %v1635_v5 = vmax.f32 %v1527_v1, 0.0 }
 0x281   : > { %v2137_v3 = vpop.f32.mrf.mxu0 }
 0x282   : > { %v1530_v4 = vadd.f32 %v2137_v3, %v2613_v61 }
 0x284   : > { %v1636_v6 = vmax.f32 %v1530_v4, 0.0 }
 0x286   : > { %v2627_v7 = vpack.c.bf16 %v1636_v6, %v1635_v5 }
 0x2a2   : > { %v1247_v8 = vpop.permute.xlu0 %1246 }
 0x2a3   : > { %v1343_v15 = vadd.f32 %v2492_v44, %v1247_v8 }
 0x2a5   : > { %v1375_v24 = vmax.f32 %v1343_v15, 0.0 }
 0x2a6   : > { %v1271_v9 = vpop.permute.xlu0 %1270  ;;  %v1249_v10 = vpop.permute.xlu1 %1248 }
 0x2a7   : > { %v1344_v13 = vadd.f32 %v2492_v44, %v1249_v10  ;;  %v1347_v31 = vadd.f32 %v2492_v44, %v1271_v9 }
 0x2a9   : > { %v1376_v21 = vmax.f32 %v1344_v13, 0.0  ;;  %v1379_v35 = vmax.f32 %v1347_v31, 0.0 }
 0x2aa   : > { %v1243_v11 = vpop.permute.xlu0 %1242  ;;  %v1273_v12 = vpop.permute.xlu1 %1272 }
 0x2ab   : > { %v1341_v14 = vadd.f32 %v2492_v44, %v1243_v11  ;;  %v1400_v28 = vpack.c.bf16 %v1376_v21, %v1375_v24  ;;  %v1348_v29 = vadd.f32 %v2492_v44, %v1273_v12 }
 0x2ad   : > { %v1373_v19 = vmax.f32 %v1341_v14, 0.0  ;;  %v1380_v43 = vmax.f32 %v1348_v29, 0.0 }
 0x2ae   : > { %v1267_v16 = vpop.permute.xlu0 %1266 }
 0x2af   : > { %v1245_v17 = vpop.permute.xlu1 %1244  ;;  %v1345_v22 = vadd.f32 %v2492_v44, %v1267_v16  ;;  %v1402_v48 = vpack.c.bf16 %v1380_v43, %v1379_v35 }
 0x2b0   : > { %v1342_v20 = vadd.f32 %v2492_v44, %v1245_v17 }
 0x2b1   : > { %v1377_v18 = vmax.f32 %v1345_v22, 0.0 }
 0x2b2   : > { %v1374_v23 = vmax.f32 %v1342_v20, 0.0 }
 0x2b3   : > { %v1269_v25 = vpop.permute.xlu1 %1268 }
 0x2b4   : > { %v1399_v26 = vpack.c.bf16 %v1374_v23, %v1373_v19  ;;  %v1346_v27 = vadd.f32 %v2492_v44, %v1269_v25 }
 0x2b6   : > { %v1378_v30 = vmax.f32 %v1346_v27, 0.0  ;;  %2142 = vmatprep.mubr.msk.bf16.mxu1 %vm764_vm4, %v1399_v26 }
 0x2b7   : > { %v1279_v32 = vpop.permute.xlu0 %1278  ;;  %2143 = vmatmul.mubr.msk.bf16.vlgmr.msra.gmra.mxu1 %vm764_vm4, %v1400_v28 }
 0x2b8   : > { %v1401_v33 = vpack.c.bf16 %v1378_v30, %v1377_v18  ;;  %v1351_v39 = vadd.f32 %v2492_v44, %v1279_v32 }
 0x2ba   : > { %2146 = vmatprep.mubr.msk.bf16.mxu1 %vm764_vm4, %v1401_v33  ;;  %v1281_v34 = vpop.permute.xlu1 %1280  ;;  %v1383_v51 = vmax.f32 %v1351_v39, 0.0 }
 0x2bb   : > { %v1299_v36 = vpop.permute.xlu0 %1298  ;;  %v1352_v57 = vadd.f32 %v2492_v44, %v1281_v34 }
 0x2bc   : > { %v1353_v45 = vadd.f32 %v2492_v44, %v1299_v36 }
 0x2bd   : > { %v1384_v46 = vmax.f32 %v1352_v57, 0.0 }
 0x2be   : > { %v1301_v37 = vpop.permute.xlu1 %1300  ;;  %v1385_v54 = vmax.f32 %v1353_v45, 0.0 }
 0x2bf   : > { %v1275_v42 = vpop.permute.xlu0 %1274  ;;  %2147 = vmatmul.mubr.msk.bf16.gmra.mxu1 %vm764_vm4, %v1402_v48  ;;  %v1354_v38 = vadd.f32 %v2492_v44, %v1301_v37  ;;  %v1404_v58 = vpack.c.bf16 %v1384_v46, %v1383_v51 }
 0x2c0   : > { %v1349_v52 = vadd.f32 %v2492_v44, %v1275_v42 }
 0x2c1   : > { %v1386_v47 = vmax.f32 %v1354_v38, 0.0 }
 0x2c2   : > { %v1277_v40 = vpop.permute.xlu1 %1276  ;;  %v1381_v49 = vmax.f32 %v1349_v52, 0.0 }
 0x2c3   : > { %v1350_v2 = vadd.f32 %v2492_v44, %v1277_v40  ;;  %v1303_v41 = vpop.permute.xlu0 %1302  ;;  %v1405_v62 = vpack.c.bf16 %v1386_v47, %v1385_v54 }
 0x2c4   : > { %v1355_v3 = vadd.f32 %v2492_v44, %v1303_v41 }
 0x2c5   : > { %v1382_v50 = vmax.f32 %v1350_v2, 0.0 }
 0x2c6   : > { %v1305_v53 = vpop.permute.xlu1 %1304  ;;  %v1387_v12 = vmax.f32 %v1355_v3, 0.0  ;;  %v2677_v3 = vpop.f32.mrf.mxu0 }
 0x2c7   : > { %v1403_v55 = vpack.c.bf16 %v1382_v50, %v1381_v49  ;;  %v1235_v56 = vpop.permute.xlu0 %1234  ;;  %v1356_v59 = vadd.f32 %v2492_v44, %v1305_v53 }
 0x2c8   : > { %v1337_v1 = vadd.f32 %v2492_v44, %v1235_v56 }
 0x2c9   : > { %2150 = vmatprep.mubr.msk.bf16.mxu1 %vm764_vm4, %v1403_v55  ;;  %v1388_v8 = vmax.f32 %v1356_v59, 0.0 }
 0x2ca   : > { %2151 = vmatmul.mubr.msk.bf16.gmra.mxu1 %vm764_vm4, %v1404_v58  ;;  %v1237_v4 = vpop.permute.xlu1 %1236  ;;  %v1369_v9 = vmax.f32 %v1337_v1, 0.0 }
 0x2cb   : > { %v1338_v5 = vadd.f32 %v2492_v44, %v1237_v4  ;;  %v1239_v6 = vpop.permute.xlu0 %1238  ;;  %2154 = vmatprep.mubr.msk.bf16.mxu1 %vm764_vm4, %v1405_v62  ;;  %v1406_v17 = vpack.c.bf16 %v1388_v8, %v1387_v12 }
 0x2cc   : > { %v1339_v11 = vadd.f32 %v2492_v44, %v1239_v6 }
 0x2cd   : > { %v1370_v10 = vmax.f32 %v1338_v5, 0.0 }
 0x2ce   : > { %v1241_v13 = vpop.permute.xlu1 %1240  ;;  %v1371_v20 = vmax.f32 %v1339_v11, 0.0 }
 0x2cf   : > { %v1397_v14 = vpack.c.bf16 %v1370_v10, %v1369_v9  ;;  %v1340_v15 = vadd.f32 %v2492_v44, %v1241_v13  ;;  %v1307_v16 = vpop.permute.xlu0 %1306 }
 0x2d0   : > { %v1357_v19 = vadd.f32 %v2492_v44, %v1307_v16 }
 0x2d1   : > { %v1372_v21 = vmax.f32 %v1340_v15, 0.0  ;;  %2138 = vmatprep.mubr.msk.bf16.mxu0 %vm764_vm4, %v1397_v14 }
 0x2d2   : > { %2155 = vmatmul.mubr.msk.bf16.gmra.mxu1 %vm764_vm4, %v1406_v17  ;;  %v1309_v22 = vpop.permute.xlu1 %1308  ;;  %v1389_v26 = vmax.f32 %v1357_v19, 0.0 }
 0x2d3   : > { %v1398_v23 = vpack.c.bf16 %v1372_v21, %v1371_v20  ;;  %v1358_v24 = vadd.f32 %v2492_v44, %v1309_v22  ;;  %v1311_v25 = vpop.permute.xlu0 %1310 }
 0x2d4   : > { %v1359_v28 = vadd.f32 %v2492_v44, %v1311_v25 }
 0x2d5   : > { %v1390_v27 = vmax.f32 %v1358_v24, 0.0  ;;  %2139 = vmatmul.mubr.msk.bf16.gmra.mxu0 %vm764_vm4, %v1398_v23 }
 0x2d6   : > { %v1313_v29 = vpop.permute.xlu1 %1312  ;;  %v1391_v31 = vmax.f32 %v1359_v28, 0.0 }
 0x2d7   : > { %v1407_v18 = vpack.c.bf16 %v1390_v27, %v1389_v26  ;;  %v1360_v30 = vadd.f32 %v2492_v44, %v1313_v29 }
 0x2d9   : > { %v1392_v32 = vmax.f32 %v1360_v30, 0.0  ;;  %2158 = vmatprep.mubr.msk.bf16.mxu1 %vm764_vm4, %v1407_v18 }
 0x2db   : > { %v1408_v33 = vpack.c.bf16 %v1392_v32, %v1391_v31 }
 0x2dd   : > { %2159 = vmatmul.mubr.msk.bf16.gmra.mxu1 %vm764_vm4, %v1408_v33 }
 0x377   : > { %v2144_v43 = vpop.f32.mrf.mxu1 }
 0x378   : > { %v1559_v22 = vadd.f32 %v2144_v43, %v2613_v61 }
 0x379   : > { %v1550_v34 = vpop.f32.mrf.mxu1 }
 0x37a   : > { %v1551_v26 = vadd.f32 %v2613_v61, %v1550_v34 }
 0x37b   : > { %v2145_v35 = vpop.f32.mrf.mxu1 }
 0x37c   : > { %v1562_v14 = vadd.f32 %v2145_v35, %v2613_v61  ;;  %v1643_v35 = vmax.f32 %v1559_v22, 0.0 }
 0x37d   : > { %v1553_v36 = vpop.f32.mrf.mxu1 }
 0x37e   : > { %v1554_v20 = vadd.f32 %v2613_v61, %v1553_v36  ;;  %v1644_v27 = vmax.f32 %v1562_v14, 0.0 }
 0x37f   : > { %v2148_v48 = vpop.f32.mrf.mxu1 }
 0x380   : > { %v1575_v42 = vadd.f32 %v2148_v48, %v2613_v61  ;;  %v1642_v32 = vmax.f32 %v1554_v20, 0.0  ;;  %v1668_v34 = vpack.c.bf16 %v1644_v27, %v1643_v35 }
 0x381   : > { %v1566_v37 = vpop.f32.mrf.mxu1 }
 0x382   : > { %v1567_v38 = vadd.f32 %v2613_v61, %v1566_v37  ;;  %v1647_v39 = vmax.f32 %v1575_v42, 0.0  ;;  %v1641_v37 = vmax.f32 %v1551_v26, 0.0 }
 0x383   : > { %v2149_v57 = vpop.f32.mrf.mxu1 }
 0x384   : > { %v1578_v44 = vadd.f32 %v2149_v57, %v2613_v61  ;;  %v1645_v2 = vmax.f32 %v1567_v38, 0.0 }
 0x385   : > { %v1569_v52 = vpop.f32.mrf.mxu1 }
 0x386   : > { %v1648_v40 = vmax.f32 %v1578_v44, 0.0  ;;  %v1570_v45 = vadd.f32 %v2613_v61, %v1569_v52  ;;  %v1667_v52 = vpack.c.bf16 %v1642_v32, %v1641_v37 }
 0x388   : > { %v2669_v41 = vpack.c.bf16 %v1648_v40, %v1647_v39  ;;  %v1646_v46 = vmax.f32 %v1570_v45, 0.0 }
 0x38a   : > { %v2671_v47 = vpack.c.bf16 %v1646_v46, %v1645_v2  ;;  %v2152_v49 = vpop.f32.mrf.mxu1 }
 0x38b   : > { %v1591_v51 = vadd.f32 %v2152_v49, %v2613_v61 }
 0x38c   : > { %v1582_v50 = vpop.f32.mrf.mxu1 }
 0x38d   : > { %v1583_v54 = vadd.f32 %v2613_v61, %v1582_v50  ;;  %v1651_v58 = vmax.f32 %v1591_v51, 0.0 }
 0x38e   : > { %v2153_v53 = vpop.f32.mrf.mxu1 }
 0x38f   : > { %v1594_v55 = vadd.f32 %v2153_v53, %v2613_v61  ;;  %v1649_v4 = vmax.f32 %v1583_v54, 0.0 }
 0x390   : > { %v1585_v56 = vpop.f32.mrf.mxu1 }
 0x391   : > { %v1652_v59 = vmax.f32 %v1594_v55, 0.0  ;;  %v1586_v62 = vadd.f32 %v2613_v61, %v1585_v56 }
 0x392   : > { %v2156_v1 = vpop.f32.mrf.mxu1 }
 0x393   : > { %v2679_v5 = vpack.c.bf16 %v1652_v59, %v1651_v58  ;;  %v1650_v6 = vmax.f32 %v1586_v62, 0.0  ;;  %v1607_v36 = vadd.f32 %v2156_v1, %v2613_v61  ;;  %v1522_v1 = vadd.f32 %v2613_v61, %v2677_v3 }
 0x394   : > { %v1598_v8 = vpop.f32.mrf.mxu1 }
 0x395   : > { %v2681_v9 = vpack.c.bf16 %v1650_v6, %v1649_v4  ;;  %v2140_v10 = vpop.f32.mrf.mxu0  ;;  %v1599_v57 = vadd.f32 %v2613_v61, %v1598_v8  ;;  %v1655_v40 = vmax.f32 %v1607_v36, 0.0  ;;  %v1519_v4 = vadd.f32 %v2613_v61, %v2621_v63 }
 0x396   : > { %v2157_v11 = vpop.f32.mrf.mxu1  ;;  %v1543_v13 = vadd.f32 %v2140_v10, %v2613_v61  ;;  %v1634_v8 = vmax.f32 %v1522_v1, 0.0 }
 0x397   : > { %v1534_v12 = vpop.f32.mrf.mxu0  ;;  %v1610_v29 = vadd.f32 %v2157_v11, %v2613_v61  ;;  %v1653_v49 = vmax.f32 %v1599_v57, 0.0 }
 0x398   : > { %v1535_v16 = vadd.f32 %v2613_v61, %v1534_v12  ;;  %v1601_v21 = vpop.f32.mrf.mxu1  ;;  %v1639_v23 = vmax.f32 %v1543_v13, 0.0 }
 0x399   : > { %v2141_v15 = vpop.f32.mrf.mxu0  ;;  %v1602_v43 = vadd.f32 %v2613_v61, %v1601_v21  ;;  %v1656_v38 = vmax.f32 %v1610_v29, 0.0 }
 0x39a   : > { %v1546_v17 = vadd.f32 %v2141_v15, %v2613_v61  ;;  %v1637_v18 = vmax.f32 %v1535_v16, 0.0 }
 0x39b   : > { %v1537_v19 = vpop.f32.mrf.mxu0  ;;  %v1654_v45 = vmax.f32 %v1602_v43, 0.0  ;;  %v1674_v50 = vpack.c.bf16 %v1656_v38, %v1655_v40 }
 0x39c   : > { %v1640_v24 = vmax.f32 %v1546_v17, 0.0  ;;  %v1538_v25 = vadd.f32 %v2613_v61, %v1537_v19 }
 0x39d   : > { %v2160_v28 = vpop.f32.mrf.mxu1  ;;  %v1673_v54 = vpack.c.bf16 %v1654_v45, %v1653_v49 }
 0x39e   : > { %v1666_v30 = vpack.c.bf16 %v1640_v24, %v1639_v23  ;;  %v1638_v31 = vmax.f32 %v1538_v25, 0.0  ;;  %v1623_v2 = vadd.f32 %v2160_v28, %v2613_v61 }
 0x39f   : > { %v1614_v33 = vpop.f32.mrf.mxu1 }
 0x3a0   : > { %v1665_v48 = vpack.c.bf16 %v1638_v31, %v1637_v18  ;;  %1683 = vrot.lane.b32.xlu1 %v1666_v30, %s2268_s24  ;;  %v1615_v51 = vadd.f32 %v2613_v61, %v1614_v33  ;;  %v1659_v55 = vmax.f32 %v1623_v2, 0.0 }
 0x3a1   : > { %v2161_v42 = vpop.f32.mrf.mxu1 }
 0x3a2   : > { %v1626_v44 = vadd.f32 %v2161_v42, %v2613_v61  ;;  %1681 = vrot.lane.b32.xlu0 %v1665_v48, %s2268_s24  ;;  %v1657_v58 = vmax.f32 %v1615_v51, 0.0 }
 0x3a3   : > { %v1617_v39 = vpop.f32.mrf.mxu1 }
 0x3a4   : > { %v1618_v46 = vadd.f32 %v2613_v61, %v1617_v39  ;;  %1687 = vrot.lane.b32.xlu1 %v1668_v34, %s2268_s24  ;;  %v1660_v53 = vmax.f32 %v1626_v44, 0.0  ;;  %v1633_v61 = vmax.f32 %v1519_v4, 0.0 }
 0x3a6   : > { %1685 = vrot.lane.b32.xlu0 %v1667_v52, %s2268_s24  ;;  %v1658_v56 = vmax.f32 %v1618_v46, 0.0  ;;  %v1676_v59 = vpack.c.bf16 %v1660_v53, %v1659_v55  ;;  %v1663_v16 = vpack.c.bf16 %v1634_v8, %v1633_v61 }
 0x3a8   : > { %1745 = vrot.lane.b32.xlu1 %v1674_v50, %s2268_s24  ;;  %v1675_v62 = vpack.c.bf16 %v1658_v56, %v1657_v58 }
 0x3aa   : > { %1743 = vrot.lane.b32.xlu0 %v1673_v54, %s2268_s24 }
 0x3ac   : > { %1749 = vrot.lane.b32.xlu1 %v1676_v59, %s2268_s24 }
 0x3ae   : > { %1747 = vrot.lane.b32.xlu0 %v1675_v62, %s2268_s24 }
 0x412   : > { %v1684_v6 = vpop.permute.xlu1 %1683 }
 0x413   : > { %v1695_v3 = vsel %vm1689_vm8, %v2619_v60, %v1684_v6 }
 0x414   : > { %v1990_v10 = vcombine.low %v1695_v3, %v1695_v3  ;;  %v1991_v11 = vcombine.high %v1695_v3, %v1695_v3  ;;  %v1682_v12 = vpop.permute.xlu0 %1681 }
 0x415   : > { %v1692_v63 = vsel %vm1689_vm8, %v2623_v0, %v1682_v12 }
 0x416   : > { %1733 = vst.msk [vmem:[%s2715_s25 + $0x10] sm:$0xf] %vm1730_vm9, %v1990_v10  ;;  %1734 = vst.msk [vmem:[%s2715_s25 + $0x14] sm:$0xf] %vm1730_vm9, %v1991_v11  ;;  %v1988_v13 = vcombine.low %v1692_v63, %v1692_v63  ;;  %v1989_v14 = vcombine.high %v1692_v63, %v1692_v63  ;;  %v1688_v15 = vpop.permute.xlu1 %1687 }
 0x417   : > { %v1701_v60 = vsel %vm1689_vm8, %v2627_v7, %v1688_v15 }
 0x418   : > { %1731 = vst.msk [vmem:[%s2715_s25] sm:$0xf] %vm1730_vm9, %v1988_v13  ;;  %1732 = vst.msk [vmem:[%s2715_s25 + $0x4] sm:$0xf] %vm1730_vm9, %v1989_v14  ;;  %v1994_v17 = vcombine.low %v1701_v60, %v1701_v60  ;;  %v1995_v0 = vcombine.high %v1701_v60, %v1701_v60  ;;  %v1686_v20 = vpop.permute.xlu0 %1685 }
 0x419   : > { %v1698_v21 = vsel %vm1689_vm8, %v1663_v16, %v1686_v20 }
 0x41a   : > { %1737 = vst.msk [vmem:[%s2715_s25 + $0x30] sm:$0xf] %vm1730_vm9, %v1994_v17  ;;  %1738 = vst.msk [vmem:[%s2715_s25 + $0x34] sm:$0xf] %vm1730_vm9, %v1995_v0  ;;  %v1992_v19 = vcombine.low %v1698_v21, %v1698_v21  ;;  %v1993_v22 = vcombine.high %v1698_v21, %v1698_v21  ;;  %v1746_v7 = vpop.permute.xlu1 %1745 }
 0x41b   : > { %v1756_v23 = vsel %vm1689_vm8, %v2669_v41, %v1746_v7 }
 0x41c   : > { %1735 = vst.msk [vmem:[%s2715_s25 + $0x20] sm:$0xf] %vm1730_vm9, %v1992_v19  ;;  %1736 = vst.msk [vmem:[%s2715_s25 + $0x24] sm:$0xf] %vm1730_vm9, %v1993_v22  ;;  %v1998_v24 = vcombine.low %v1756_v23, %v1756_v23  ;;  %v1999_v25 = vcombine.high %v1756_v23, %v1756_v23  ;;  %v1744_v26 = vpop.permute.xlu0 %1743 }
 0x41d   : > { %v1753_v27 = vsel %vm1689_vm8, %v2671_v47, %v1744_v26 }
 0x41e   : > { %2006 = vst.msk [vmem:[%s2715_s25 + $0x18] sm:$0xf] %vm1730_vm9, %v1998_v24  ;;  %2007 = vst.msk [vmem:[%s2715_s25 + $0x1c] sm:$0xf] %vm1730_vm9, %v1999_v25  ;;  %v1996_v28 = vcombine.low %v1753_v27, %v1753_v27  ;;  %v1997_v41 = vcombine.high %v1753_v27, %v1753_v27  ;;  %v1750_v29 = vpop.permute.xlu1 %1749 }
 0x41f   : > { %v1762_v18 = vsel %vm1689_vm8, %v2679_v5, %v1750_v29 }
 0x420   : > { %2004 = vst.msk [vmem:[%s2715_s25 + $0x8] sm:$0xf] %vm1730_vm9, %v1996_v28  ;;  %2005 = vst.msk [vmem:[%s2715_s25 + $0xc] sm:$0xf] %vm1730_vm9, %v1997_v41  ;;  %v2002_v30 = vcombine.low %v1762_v18, %v1762_v18  ;;  %v2003_v31 = vcombine.high %v1762_v18, %v1762_v18  ;;  %v1748_v32 = vpop.permute.xlu0 %1747 }
 0x421   : > { %v1759_v47 = vsel %vm1689_vm8, %v2681_v9, %v1748_v32 }
 0x422   : > { %2010 = vst.msk [vmem:[%s2715_s25 + $0x38] sm:$0xf] %vm1730_vm9, %v2002_v30  ;;  %2011 = vst.msk [vmem:[%s2715_s25 + $0x3c] sm:$0xf] %vm1730_vm9, %v2003_v31  ;;  %v2000_v33 = vcombine.low %v1759_v47, %v1759_v47  ;;  %v2001_v35 = vcombine.high %v1759_v47, %v1759_v47 }
 0x424   : > { %2008 = vst.msk [vmem:[%s2715_s25 + $0x28] sm:$0xf] %vm1730_vm9, %v2000_v33  ;;  %2009 = vst.msk [vmem:[%s2715_s25 + $0x2c] sm:$0xf] %vm1730_vm9, %v2001_v35 }
 0x425 PF: > { %s21_s21 = sadd.s32 1, %s2264_s21   ;;  %s2793_s17 = smov %s2256_s19 }
 0x426   : > { %p18_p10 = scmp.ge.s32.totalorder %s21_s21, 8   ;;  %s2794_s18 = smov %s2260_s20 }
 0x427   : > { %s2795_s19 = smov %s2798_s22  ;;  %s2796_s20 = smov %s2802_s23 }
 0x428   :  { %20 = sbr.rel (!%p18_p10) target bundleno = 3 (0x3), region = 98 }

</bundles_post_ra>
